<compile_context>
chip_gen: v7x
topology: tpu7x:2x2x1
jax: 0.10.0
libtpu: 0.0.40
codegen_flags: <defaults>
</compile_context>

<pallas_src>
import jax
import jax.numpy as jnp
from jax.experimental import pallas as pl
from jax.experimental.pallas import tpu as pltpu

LN_EPS = 1e-5
NEG_INF = -1e30   # finite stand-in for -inf (avoids NaN on fully-masked rows)

WEIGHT_KEYS = ('ln1_g', 'ln1_b',
               'wq', 'bq', 'wk', 'bk', 'wv', 'bv', 'wo', 'bo',
               'ln2_g', 'ln2_b',
               'w1', 'b1', 'w2', 'b2')


def _make_encoder_layer_kernel(num_heads):
    """Build the fused kernel. num_heads is a Python static."""
    H = num_heads

    def kernel(x_ref, mask_ref,
               ln1_g_ref, ln1_b_ref,
               wq_ref, bq_ref, wk_ref, bk_ref, wv_ref, bv_ref,
               wo_ref, bo_ref,
               ln2_g_ref, ln2_b_ref,
               w1_ref, b1_ref, w2_ref, b2_ref,
               y_ref, kv_ref):
        x = x_ref[0]                        # (T, D) f32
        T, D = x.shape
        dk = D // H
        scale = 1.0 / float(dk ** 0.5)

        valid = mask_ref[0]                 # (1, T): 1.0 keep / 0.0 masked key
        key_bias = jnp.where(valid > 0.5, 0.0, NEG_INF)   # (1, T)

        def layer_norm(v, g, b):
            mu = jnp.mean(v, axis=-1, keepdims=True)
            # single-pass variance (perf feedback): E[x^2] - E[x]^2
            var = jnp.mean(v * v, axis=-1, keepdims=True) - mu * mu
            return (v - mu) * jax.lax.rsqrt(var + LN_EPS) * g + b

        # hoisted weight loads (reused across the unrolled head loop)
        wq, wk, wv, wo = wq_ref[...], wk_ref[...], wv_ref[...], wo_ref[...]
        bq, bk, bv, bo = bq_ref[...], bk_ref[...], bv_ref[...], bo_ref[...]

        # ---- sub-block 1: pre-norm + multi-head self-attention + residual ----
        xn = layer_norm(x, ln1_g_ref[...], ln1_b_ref[...])
        q = jnp.dot(xn, wq, preferred_element_type=jnp.float32) + bq
        k = jnp.dot(xn, wk, preferred_element_type=jnp.float32) + bk
        v = jnp.dot(xn, wv, preferred_element_type=jnp.float32) + bv

        att = jnp.zeros((T, D), jnp.float32)
        for h in range(H):                  # static unroll over heads
            lo, hi = h * dk, (h + 1) * dk
            qh, kh, vh = q[:, lo:hi], k[:, lo:hi], v[:, lo:hi]
            # q @ k^T without an explicit transpose (MXU-native contraction)
            s = jax.lax.dot_general(qh, kh, (((1,), (1,)), ((), ())),
                                    preferred_element_type=jnp.float32) * scale
            s = s + key_bias                              # mask key positions
            m = jnp.max(s, axis=-1, keepdims=True)
            e = jnp.exp(s - m)
            p = e / jnp.sum(e, axis=-1, keepdims=True)
            p = p * valid                                 # zero masked keys
            head = jnp.dot(p, vh, preferred_element_type=jnp.float32)     # (T, dk)
            # fold the output projection per head: ctx @ Wo == sum_h head_h @ Wo_h
            att = att + jnp.dot(head, wo[lo:hi, :],
                                preferred_element_type=jnp.float32)
        # TODO(synk): train-mode nn.Dropout (random mask) not reproduced; eval identity.
        x1 = x + att + bo                   # residual add (dropout == identity)

        # ---- sub-block 2: pre-norm + position-wise feed-forward + residual ----
        xn2 = layer_norm(x1, ln2_g_ref[...], ln2_b_ref[...])
        hdn = jnp.maximum(
            jnp.dot(xn2, w1_ref[...], preferred_element_type=jnp.float32)
            + b1_ref[...], 0.0)
        ff = jnp.dot(hdn, w2_ref[...], preferred_element_type=jnp.float32) + b2_ref[...]
        y_ref[0] = x1 + ff

        # lane-dense packed new attention cache: (T, 2*D) = [k | v]
        kv_ref[0] = jnp.concatenate([k, v], axis=-1)

    return kernel


def encoder_layer_forward(params, x, mask, num_heads):
    """Matches TransformerEncoderLayer.forward with the default (empty) caches.

    x: (B, T, D) f32, mask: (B, 1, T) bool (True = keep).
    Returns (y, mask, new_att_cache, fake_cnn_cache).
    """
    # TODO(synk): non-empty att_cache (K/V concatenation) not implemented;
    # only the default empty-cache path of the module is reproduced.
    B, T, D = x.shape
    dk = D // num_heads

    mask_f = mask.astype(jnp.float32)                      # (B, 1, T)
    weights = [params[kname] for kname in WEIGHT_KEYS]      # all 2-D

    in_specs = [pl.BlockSpec((1, T, D), lambda b: (b, 0, 0)),
                pl.BlockSpec((1, 1, T), lambda b: (b, 0, 0))]
    in_specs += [pl.BlockSpec(w.shape, lambda b: (0, 0)) for w in weights]

    out_specs = (pl.BlockSpec((1, T, D), lambda b: (b, 0, 0)),
                 pl.BlockSpec((1, T, 2 * D), lambda b: (b, 0, 0)))
    out_shape = (jax.ShapeDtypeStruct((B, T, D), jnp.float32),
                 jax.ShapeDtypeStruct((B, T, 2 * D), jnp.float32))

    y, kv_packed = pl.pallas_call(
        _make_encoder_layer_kernel(num_heads),
        grid=(B,),
        in_specs=in_specs,
        out_specs=out_specs,
        out_shape=out_shape,
        compiler_params=pltpu.CompilerParams(
            dimension_semantics=("parallel",)),
    )(x, mask_f, *weights)

    # plain-JAX glue: unpack lane-dense cache to PyTorch layout (B, H, T, 2*d_k)
    k = kv_packed[..., :D].reshape(B, T, num_heads, dk).transpose(0, 2, 1, 3)
    v = kv_packed[..., D:].reshape(B, T, num_heads, dk).transpose(0, 2, 1, 3)
    new_att_cache = jnp.concatenate([k, v], axis=-1)
    fake_cnn_cache = jnp.zeros((0, 0, 0), x.dtype)
    return y, mask, new_att_cache, fake_cnn_cache


def reference_forward(params, x, mask, num_heads):
    """Pure-JAX reference reproducing the PyTorch forward (eval-mode dropout)."""
    B, T, D = x.shape
    dk = D // num_heads
    hp = jax.lax.Precision.HIGHEST

    def ln(v, g, b):
        mu = jnp.mean(v, axis=-1, keepdims=True)
        var = jnp.mean(jnp.square(v - mu), axis=-1, keepdims=True)
        return (v - mu) / jnp.sqrt(var + LN_EPS) * g + b

    residual = x
    xn = ln(x, params['ln1_g'], params['ln1_b'])
    q = jnp.dot(xn, params['wq'], precision=hp) + params['bq']
    k = jnp.dot(xn, params['wk'], precision=hp) + params['bk']
    v = jnp.dot(xn, params['wv'], precision=hp) + params['bv']
    qh = q.reshape(B, T, num_heads, dk).transpose(0, 2, 1, 3)
    kh = k.reshape(B, T, num_heads, dk).transpose(0, 2, 1, 3)
    vh = v.reshape(B, T, num_heads, dk).transpose(0, 2, 1, 3)
    new_att_cache = jnp.concatenate([kh, vh], axis=-1)          # (B, H, T, 2*dk)

    scores = jnp.einsum('bhtd,bhsd->bhts', qh, kh, precision=hp) / (dk ** 0.5)
    keep = mask[:, None, :, :]                                  # (B, 1, 1, T)
    scores = scores + jnp.where(keep, 0.0, NEG_INF)
    attn = jax.nn.softmax(scores, axis=-1)
    attn = jnp.where(keep, attn, 0.0)
    ctx = jnp.einsum('bhts,bhsd->bhtd', attn, vh, precision=hp)
    ctx = ctx.transpose(0, 2, 1, 3).reshape(B, T, D)
    x_att = jnp.dot(ctx, params['wo'], precision=hp) + params['bo']
    x1 = residual + x_att

    xn2 = ln(x1, params['ln2_g'], params['ln2_b'])
    hdn = jnp.maximum(jnp.dot(xn2, params['w1'], precision=hp) + params['b1'], 0.0)
    ff = jnp.dot(hdn, params['w2'], precision=hp) + params['b2']
    y = x1 + ff
    return y, mask, new_att_cache, jnp.zeros((0, 0, 0), x.dtype)


if __name__ == "__main__":
    # Small shapes consistent with the module: batch=2, time=16, size=64,
    # heads=4 (d_k=16), FFN hidden=128.
    B, T, D, H, F = 2, 16, 64, 4, 128
    dk = D // H
    s = 0.1

    key = jax.random.PRNGKey(0)
    ks = jax.random.split(key, len(WEIGHT_KEYS) + 2)

    shapes = {
        'ln1_g': (1, D), 'ln1_b': (1, D),
        'wq': (D, D), 'bq': (1, D), 'wk': (D, D), 'bk': (1, D),
        'wv': (D, D), 'bv': (1, D), 'wo': (D, D), 'bo': (1, D),
        'ln2_g': (1, D), 'ln2_b': (1, D),
        'w1': (D, F), 'b1': (1, F), 'w2': (F, D), 'b2': (1, D),
    }
    params = {}
    for i, kname in enumerate(WEIGHT_KEYS):
        w = s * jax.random.normal(ks[i], shapes[kname], jnp.float32)
        if kname in ('ln1_g', 'ln2_g'):
            w = 1.0 + w
        params[kname] = w

    x = jax.random.normal(ks[-2], (B, T, D), jnp.float32)
    # padding mask: batch 1 has its last 4 frames padded out
    mask = jnp.ones((B, 1, T), jnp.bool_).at[1, :, T - 4:].set(False)

    y, mask_out, att_cache, cnn_cache = encoder_layer_forward(params, x, mask, H)
    y = jax.block_until_ready(y)
    att_cache = jax.block_until_ready(att_cache)

    ref_y, _, ref_cache, _ = reference_forward(params, x, mask, H)

    assert y.shape == (B, T, D)
    assert att_cache.shape == (B, H, T, 2 * dk)
    assert cnn_cache.shape == (0, 0, 0)
    assert bool(jnp.all(mask_out == mask))
    assert jnp.allclose(y, ref_y, atol=1e-2, rtol=1e-2), "output mismatch"
    assert jnp.allclose(att_cache, ref_cache, atol=1e-2, rtol=1e-2), "att_cache mismatch"

    print("KERNEL_OK")
</pallas_src>

<mosaic_0001>
module attributes {stable_mosaic.version = 11 : i64} {
  func.func @kernel(%arg0: i32, %arg1: memref<1x16x64xf32, #tpu.memory_space<vmem>>, %arg2: memref<1x1x16xf32, #tpu.memory_space<vmem>>, %arg3: memref<1x64xf32, #tpu.memory_space<vmem>>, %arg4: memref<1x64xf32, #tpu.memory_space<vmem>>, %arg5: memref<64x64xf32, #tpu.memory_space<vmem>>, %arg6: memref<1x64xf32, #tpu.memory_space<vmem>>, %arg7: memref<64x64xf32, #tpu.memory_space<vmem>>, %arg8: memref<1x64xf32, #tpu.memory_space<vmem>>, %arg9: memref<64x64xf32, #tpu.memory_space<vmem>>, %arg10: memref<1x64xf32, #tpu.memory_space<vmem>>, %arg11: memref<64x64xf32, #tpu.memory_space<vmem>>, %arg12: memref<1x64xf32, #tpu.memory_space<vmem>>, %arg13: memref<1x64xf32, #tpu.memory_space<vmem>>, %arg14: memref<1x64xf32, #tpu.memory_space<vmem>>, %arg15: memref<64x128xf32, #tpu.memory_space<vmem>>, %arg16: memref<1x128xf32, #tpu.memory_space<vmem>>, %arg17: memref<128x64xf32, #tpu.memory_space<vmem>>, %arg18: memref<1x64xf32, #tpu.memory_space<vmem>>, %arg19: memref<1x16x64xf32, #tpu.memory_space<vmem>>, %arg20: memref<1x16x128xf32, #tpu.memory_space<vmem>>) attributes {dimension_semantics = [#tpu.dimension_semantics<parallel>], iteration_bounds = array<i64: 2>, scalar_prefetch = 0 : i64, scratch_operands = 0 : i64, tpu.core_type = #tpu.core_type<tc>, window_params = [{transform_indices = @transform_0, window_bounds = array<i64: 1, 16, 64>}, {transform_indices = @transform_1, window_bounds = array<i64: 1, 1, 16>}, {pipeline_mode = #tpu.pipeline_mode<synchronous>, transform_indices = @transform_2, window_bounds = array<i64: 1, 64>}, {pipeline_mode = #tpu.pipeline_mode<synchronous>, transform_indices = @transform_3, window_bounds = array<i64: 1, 64>}, {pipeline_mode = #tpu.pipeline_mode<synchronous>, transform_indices = @transform_4, window_bounds = array<i64: 64, 64>}, {pipeline_mode = #tpu.pipeline_mode<synchronous>, transform_indices = @transform_5, window_bounds = array<i64: 1, 64>}, {pipeline_mode = #tpu.pipeline_mode<synchronous>, transform_indices = @transform_6, window_bounds = array<i64: 64, 64>}, {pipeline_mode = #tpu.pipeline_mode<synchronous>, transform_indices = @transform_7, window_bounds = array<i64: 1, 64>}, {pipeline_mode = #tpu.pipeline_mode<synchronous>, transform_indices = @transform_8, window_bounds = array<i64: 64, 64>}, {pipeline_mode = #tpu.pipeline_mode<synchronous>, transform_indices = @transform_9, window_bounds = array<i64: 1, 64>}, {pipeline_mode = #tpu.pipeline_mode<synchronous>, transform_indices = @transform_10, window_bounds = array<i64: 64, 64>}, {pipeline_mode = #tpu.pipeline_mode<synchronous>, transform_indices = @transform_11, window_bounds = array<i64: 1, 64>}, {pipeline_mode = #tpu.pipeline_mode<synchronous>, transform_indices = @transform_12, window_bounds = array<i64: 1, 64>}, {pipeline_mode = #tpu.pipeline_mode<synchronous>, transform_indices = @transform_13, window_bounds = array<i64: 1, 64>}, {pipeline_mode = #tpu.pipeline_mode<synchronous>, transform_indices = @transform_14, window_bounds = array<i64: 64, 128>}, {pipeline_mode = #tpu.pipeline_mode<synchronous>, transform_indices = @transform_15, window_bounds = array<i64: 1, 128>}, {pipeline_mode = #tpu.pipeline_mode<synchronous>, transform_indices = @transform_16, window_bounds = array<i64: 128, 64>}, {pipeline_mode = #tpu.pipeline_mode<synchronous>, transform_indices = @transform_17, window_bounds = array<i64: 1, 64>}, {transform_indices = @transform_18, window_bounds = array<i64: 1, 16, 64>}, {transform_indices = @transform_19, window_bounds = array<i64: 1, 16, 128>}]} {
    %c0 = arith.constant 0 : index
    %c0_0 = arith.constant 0 : index
    %c0_1 = arith.constant 0 : index
    %0 = vector.load %arg1[%c0, %c0_0, %c0_1] : memref<1x16x64xf32, #tpu.memory_space<vmem>>, vector<1x16x64xf32>
    %1 = vector.shape_cast %0 : vector<1x16x64xf32> to vector<16x64xf32>
    %c0_2 = arith.constant 0 : index
    %c0_3 = arith.constant 0 : index
    %c0_4 = arith.constant 0 : index
    %2 = vector.load %arg2[%c0_2, %c0_3, %c0_4] : memref<1x1x16xf32, #tpu.memory_space<vmem>>, vector<1x1x16xf32>
    %3 = vector.shape_cast %2 : vector<1x1x16xf32> to vector<1x16xf32>
    %cst = arith.constant 5.000000e-01 : f32
    %4 = vector.broadcast %cst : f32 to vector<1x16xf32>
    %5 = arith.cmpf ogt, %3, %4 : vector<1x16xf32>
    %cst_5 = arith.constant 0.000000e+00 : f32
    %cst_6 = arith.constant -1.000000e+30 : f32
    %6 = vector.broadcast %cst_5 : f32 to vector<1x16xf32>
    %7 = vector.broadcast %cst_6 : f32 to vector<1x16xf32>
    %8 = arith.select %5, %6, %7 : vector<1x16xi1>, vector<1x16xf32>
    %c0_7 = arith.constant 0 : index
    %c0_8 = arith.constant 0 : index
    %9 = vector.load %arg5[%c0_7, %c0_8] : memref<64x64xf32, #tpu.memory_space<vmem>>, vector<64x64xf32>
    %c0_9 = arith.constant 0 : index
    %c0_10 = arith.constant 0 : index
    %10 = vector.load %arg7[%c0_9, %c0_10] : memref<64x64xf32, #tpu.memory_space<vmem>>, vector<64x64xf32>
    %c0_11 = arith.constant 0 : index
    %c0_12 = arith.constant 0 : index
    %11 = vector.load %arg9[%c0_11, %c0_12] : memref<64x64xf32, #tpu.memory_space<vmem>>, vector<64x64xf32>
    %c0_13 = arith.constant 0 : index
    %c0_14 = arith.constant 0 : index
    %12 = vector.load %arg11[%c0_13, %c0_14] : memref<64x64xf32, #tpu.memory_space<vmem>>, vector<64x64xf32>
    %c0_15 = arith.constant 0 : index
    %c0_16 = arith.constant 0 : index
    %13 = vector.load %arg6[%c0_15, %c0_16] : memref<1x64xf32, #tpu.memory_space<vmem>>, vector<1x64xf32>
    %c0_17 = arith.constant 0 : index
    %c0_18 = arith.constant 0 : index
    %14 = vector.load %arg8[%c0_17, %c0_18] : memref<1x64xf32, #tpu.memory_space<vmem>>, vector<1x64xf32>
    %c0_19 = arith.constant 0 : index
    %c0_20 = arith.constant 0 : index
    %15 = vector.load %arg10[%c0_19, %c0_20] : memref<1x64xf32, #tpu.memory_space<vmem>>, vector<1x64xf32>
    %c0_21 = arith.constant 0 : index
    %c0_22 = arith.constant 0 : index
    %16 = vector.load %arg12[%c0_21, %c0_22] : memref<1x64xf32, #tpu.memory_space<vmem>>, vector<1x64xf32>
    %c0_23 = arith.constant 0 : index
    %c0_24 = arith.constant 0 : index
    %17 = vector.load %arg3[%c0_23, %c0_24] : memref<1x64xf32, #tpu.memory_space<vmem>>, vector<1x64xf32>
    %c0_25 = arith.constant 0 : index
    %c0_26 = arith.constant 0 : index
    %18 = vector.load %arg4[%c0_25, %c0_26] : memref<1x64xf32, #tpu.memory_space<vmem>>, vector<1x64xf32>
    %cst_27 = arith.constant dense<0.000000e+00> : vector<16xf32>
    %19 = vector.multi_reduction <add>, %1, %cst_27 [1] : vector<16x64xf32> to vector<16xf32>
    %20 = vector.shape_cast %19 : vector<16xf32> to vector<16x1xf32>
    %cst_28 = arith.constant 6.400000e+01 : f32
    %21 = vector.broadcast %cst_28 : f32 to vector<16x1xf32>
    %22 = arith.divf %20, %21 : vector<16x1xf32>
    %23 = arith.mulf %1, %1 : vector<16x64xf32>
    %cst_29 = arith.constant dense<0.000000e+00> : vector<16xf32>
    %24 = vector.multi_reduction <add>, %23, %cst_29 [1] : vector<16x64xf32> to vector<16xf32>
    %25 = vector.shape_cast %24 : vector<16xf32> to vector<16x1xf32>
    %cst_30 = arith.constant 6.400000e+01 : f32
    %26 = vector.broadcast %cst_30 : f32 to vector<16x1xf32>
    %27 = arith.divf %25, %26 : vector<16x1xf32>
    %28 = arith.mulf %22, %22 : vector<16x1xf32>
    %29 = arith.subf %27, %28 : vector<16x1xf32>
    %30 = vector.broadcast %22 : vector<16x1xf32> to vector<16x64xf32>
    %31 = arith.subf %1, %30 : vector<16x64xf32>
    %cst_31 = arith.constant 9.99999974E-6 : f32
    %32 = vector.broadcast %cst_31 : f32 to vector<16x1xf32>
    %33 = arith.addf %29, %32 : vector<16x1xf32>
    %34 = math.rsqrt %33 : vector<16x1xf32>
    %35 = vector.broadcast %34 : vector<16x1xf32> to vector<16x64xf32>
    %36 = arith.mulf %31, %35 : vector<16x64xf32>
    %37 = vector.broadcast %17 : vector<1x64xf32> to vector<16x64xf32>
    %38 = arith.mulf %36, %37 : vector<16x64xf32>
    %39 = vector.broadcast %18 : vector<1x64xf32> to vector<16x64xf32>
    %40 = arith.addf %38, %39 : vector<16x64xf32>
    %cst_32 = arith.constant dense<0.000000e+00> : vector<16x64xf32>
    %41 = tpu.matmul %40, %9, %cst_32 {dimension_numbers = #tpu.dot_dimension_numbers<[1], [0], [0], [1], [0, 0, 1, 1], [], []>} : vector<16x64xf32>, vector<64x64xf32>, vector<16x64xf32> -> vector<16x64xf32>
    %42 = vector.broadcast %13 : vector<1x64xf32> to vector<16x64xf32>
    %43 = arith.addf %41, %42 : vector<16x64xf32>
    %cst_33 = arith.constant dense<0.000000e+00> : vector<16x64xf32>
    %44 = tpu.matmul %40, %10, %cst_33 {dimension_numbers = #tpu.dot_dimension_numbers<[1], [0], [0], [1], [0, 0, 1, 1], [], []>} : vector<16x64xf32>, vector<64x64xf32>, vector<16x64xf32> -> vector<16x64xf32>
    %45 = vector.broadcast %14 : vector<1x64xf32> to vector<16x64xf32>
    %46 = arith.addf %44, %45 : vector<16x64xf32>
    %cst_34 = arith.constant dense<0.000000e+00> : vector<16x64xf32>
    %47 = tpu.matmul %40, %11, %cst_34 {dimension_numbers = #tpu.dot_dimension_numbers<[1], [0], [0], [1], [0, 0, 1, 1], [], []>} : vector<16x64xf32>, vector<64x64xf32>, vector<16x64xf32> -> vector<16x64xf32>
    %48 = vector.broadcast %15 : vector<1x64xf32> to vector<16x64xf32>
    %49 = arith.addf %47, %48 : vector<16x64xf32>
    %cst_35 = arith.constant 0.000000e+00 : f32
    %50 = vector.broadcast %cst_35 : f32 to vector<16x64xf32>
    %51 = vector.extract_strided_slice %43 {offsets = [0, 0], sizes = [16, 16], strides = [1, 1]} : vector<16x64xf32> to vector<16x16xf32>
    %52 = vector.extract_strided_slice %46 {offsets = [0, 0], sizes = [16, 16], strides = [1, 1]} : vector<16x64xf32> to vector<16x16xf32>
    %53 = vector.extract_strided_slice %49 {offsets = [0, 0], sizes = [16, 16], strides = [1, 1]} : vector<16x64xf32> to vector<16x16xf32>
    %cst_36 = arith.constant dense<0.000000e+00> : vector<16x16xf32>
    %54 = tpu.matmul %51, %52, %cst_36 {dimension_numbers = #tpu.dot_dimension_numbers<[1], [1], [0], [0], [0, 0, 1, 0], [], []>} : vector<16x16xf32>, vector<16x16xf32>, vector<16x16xf32> -> vector<16x16xf32>
    %cst_37 = arith.constant 2.500000e-01 : f32
    %55 = vector.broadcast %cst_37 : f32 to vector<16x16xf32>
    %56 = arith.mulf %54, %55 : vector<16x16xf32>
    %57 = vector.broadcast %8 : vector<1x16xf32> to vector<16x16xf32>
    %58 = arith.addf %56, %57 : vector<16x16xf32>
    %cst_38 = arith.constant dense<0xFF800000> : vector<16xf32>
    %59 = vector.multi_reduction <maximumf>, %58, %cst_38 [1] : vector<16x16xf32> to vector<16xf32>
    %60 = vector.shape_cast %59 : vector<16xf32> to vector<16x1xf32>
    %61 = vector.broadcast %60 : vector<16x1xf32> to vector<16x16xf32>
    %62 = arith.subf %58, %61 : vector<16x16xf32>
    %63 = math.exp %62 : vector<16x16xf32>
    %cst_39 = arith.constant dense<0.000000e+00> : vector<16xf32>
    %64 = vector.multi_reduction <add>, %63, %cst_39 [1] : vector<16x16xf32> to vector<16xf32>
    %65 = vector.shape_cast %64 : vector<16xf32> to vector<16x1xf32>
    %66 = vector.broadcast %65 : vector<16x1xf32> to vector<16x16xf32>
    %67 = arith.divf %63, %66 : vector<16x16xf32>
    %68 = vector.broadcast %3 : vector<1x16xf32> to vector<16x16xf32>
    %69 = arith.mulf %67, %68 : vector<16x16xf32>
    %cst_40 = arith.constant dense<0.000000e+00> : vector<16x16xf32>
    %70 = tpu.matmul %69, %53, %cst_40 {dimension_numbers = #tpu.dot_dimension_numbers<[1], [0], [0], [1], [0, 0, 1, 1], [], []>} : vector<16x16xf32>, vector<16x16xf32>, vector<16x16xf32> -> vector<16x16xf32>
    %71 = vector.extract_strided_slice %12 {offsets = [0, 0], sizes = [16, 64], strides = [1, 1]} : vector<64x64xf32> to vector<16x64xf32>
    %cst_41 = arith.constant dense<0.000000e+00> : vector<16x64xf32>
    %72 = tpu.matmul %70, %71, %cst_41 {dimension_numbers = #tpu.dot_dimension_numbers<[1], [0], [0], [1], [0, 0, 1, 1], [], []>} : vector<16x16xf32>, vector<16x64xf32>, vector<16x64xf32> -> vector<16x64xf32>
    %73 = arith.addf %50, %72 : vector<16x64xf32>
    %74 = vector.extract_strided_slice %43 {offsets = [0, 16], sizes = [16, 16], strides = [1, 1]} : vector<16x64xf32> to vector<16x16xf32>
    %75 = vector.extract_strided_slice %46 {offsets = [0, 16], sizes = [16, 16], strides = [1, 1]} : vector<16x64xf32> to vector<16x16xf32>
    %76 = vector.extract_strided_slice %49 {offsets = [0, 16], sizes = [16, 16], strides = [1, 1]} : vector<16x64xf32> to vector<16x16xf32>
    %cst_42 = arith.constant dense<0.000000e+00> : vector<16x16xf32>
    %77 = tpu.matmul %74, %75, %cst_42 {dimension_numbers = #tpu.dot_dimension_numbers<[1], [1], [0], [0], [0, 0, 1, 0], [], []>} : vector<16x16xf32>, vector<16x16xf32>, vector<16x16xf32> -> vector<16x16xf32>
    %cst_43 = arith.constant 2.500000e-01 : f32
    %78 = vector.broadcast %cst_43 : f32 to vector<16x16xf32>
    %79 = arith.mulf %77, %78 : vector<16x16xf32>
    %80 = vector.broadcast %8 : vector<1x16xf32> to vector<16x16xf32>
    %81 = arith.addf %79, %80 : vector<16x16xf32>
    %cst_44 = arith.constant dense<0xFF800000> : vector<16xf32>
    %82 = vector.multi_reduction <maximumf>, %81, %cst_44 [1] : vector<16x16xf32> to vector<16xf32>
    %83 = vector.shape_cast %82 : vector<16xf32> to vector<16x1xf32>
    %84 = vector.broadcast %83 : vector<16x1xf32> to vector<16x16xf32>
    %85 = arith.subf %81, %84 : vector<16x16xf32>
    %86 = math.exp %85 : vector<16x16xf32>
    %cst_45 = arith.constant dense<0.000000e+00> : vector<16xf32>
    %87 = vector.multi_reduction <add>, %86, %cst_45 [1] : vector<16x16xf32> to vector<16xf32>
    %88 = vector.shape_cast %87 : vector<16xf32> to vector<16x1xf32>
    %89 = vector.broadcast %88 : vector<16x1xf32> to vector<16x16xf32>
    %90 = arith.divf %86, %89 : vector<16x16xf32>
    %91 = vector.broadcast %3 : vector<1x16xf32> to vector<16x16xf32>
    %92 = arith.mulf %90, %91 : vector<16x16xf32>
    %cst_46 = arith.constant dense<0.000000e+00> : vector<16x16xf32>
    %93 = tpu.matmul %92, %76, %cst_46 {dimension_numbers = #tpu.dot_dimension_numbers<[1], [0], [0], [1], [0, 0, 1, 1], [], []>} : vector<16x16xf32>, vector<16x16xf32>, vector<16x16xf32> -> vector<16x16xf32>
    %94 = vector.extract_strided_slice %12 {offsets = [16, 0], sizes = [16, 64], strides = [1, 1]} : vector<64x64xf32> to vector<16x64xf32>
    %cst_47 = arith.constant dense<0.000000e+00> : vector<16x64xf32>
    %95 = tpu.matmul %93, %94, %cst_47 {dimension_numbers = #tpu.dot_dimension_numbers<[1], [0], [0], [1], [0, 0, 1, 1], [], []>} : vector<16x16xf32>, vector<16x64xf32>, vector<16x64xf32> -> vector<16x64xf32>
    %96 = arith.addf %73, %95 : vector<16x64xf32>
    %97 = vector.extract_strided_slice %43 {offsets = [0, 32], sizes = [16, 16], strides = [1, 1]} : vector<16x64xf32> to vector<16x16xf32>
    %98 = vector.extract_strided_slice %46 {offsets = [0, 32], sizes = [16, 16], strides = [1, 1]} : vector<16x64xf32> to vector<16x16xf32>
    %99 = vector.extract_strided_slice %49 {offsets = [0, 32], sizes = [16, 16], strides = [1, 1]} : vector<16x64xf32> to vector<16x16xf32>
    %cst_48 = arith.constant dense<0.000000e+00> : vector<16x16xf32>
    %100 = tpu.matmul %97, %98, %cst_48 {dimension_numbers = #tpu.dot_dimension_numbers<[1], [1], [0], [0], [0, 0, 1, 0], [], []>} : vector<16x16xf32>, vector<16x16xf32>, vector<16x16xf32> -> vector<16x16xf32>
    %cst_49 = arith.constant 2.500000e-01 : f32
    %101 = vector.broadcast %cst_49 : f32 to vector<16x16xf32>
    %102 = arith.mulf %100, %101 : vector<16x16xf32>
    %103 = vector.broadcast %8 : vector<1x16xf32> to vector<16x16xf32>
    %104 = arith.addf %102, %103 : vector<16x16xf32>
    %cst_50 = arith.constant dense<0xFF800000> : vector<16xf32>
    %105 = vector.multi_reduction <maximumf>, %104, %cst_50 [1] : vector<16x16xf32> to vector<16xf32>
    %106 = vector.shape_cast %105 : vector<16xf32> to vector<16x1xf32>
    %107 = vector.broadcast %106 : vector<16x1xf32> to vector<16x16xf32>
    %108 = arith.subf %104, %107 : vector<16x16xf32>
    %109 = math.exp %108 : vector<16x16xf32>
    %cst_51 = arith.constant dense<0.000000e+00> : vector<16xf32>
    %110 = vector.multi_reduction <add>, %109, %cst_51 [1] : vector<16x16xf32> to vector<16xf32>
    %111 = vector.shape_cast %110 : vector<16xf32> to vector<16x1xf32>
    %112 = vector.broadcast %111 : vector<16x1xf32> to vector<16x16xf32>
    %113 = arith.divf %109, %112 : vector<16x16xf32>
    %114 = vector.broadcast %3 : vector<1x16xf32> to vector<16x16xf32>
    %115 = arith.mulf %113, %114 : vector<16x16xf32>
    %cst_52 = arith.constant dense<0.000000e+00> : vector<16x16xf32>
    %116 = tpu.matmul %115, %99, %cst_52 {dimension_numbers = #tpu.dot_dimension_numbers<[1], [0], [0], [1], [0, 0, 1, 1], [], []>} : vector<16x16xf32>, vector<16x16xf32>, vector<16x16xf32> -> vector<16x16xf32>
    %117 = vector.extract_strided_slice %12 {offsets = [32, 0], sizes = [16, 64], strides = [1, 1]} : vector<64x64xf32> to vector<16x64xf32>
    %cst_53 = arith.constant dense<0.000000e+00> : vector<16x64xf32>
    %118 = tpu.matmul %116, %117, %cst_53 {dimension_numbers = #tpu.dot_dimension_numbers<[1], [0], [0], [1], [0, 0, 1, 1], [], []>} : vector<16x16xf32>, vector<16x64xf32>, vector<16x64xf32> -> vector<16x64xf32>
    %119 = arith.addf %96, %118 : vector<16x64xf32>
    %120 = vector.extract_strided_slice %43 {offsets = [0, 48], sizes = [16, 16], strides = [1, 1]} : vector<16x64xf32> to vector<16x16xf32>
    %121 = vector.extract_strided_slice %46 {offsets = [0, 48], sizes = [16, 16], strides = [1, 1]} : vector<16x64xf32> to vector<16x16xf32>
    %122 = vector.extract_strided_slice %49 {offsets = [0, 48], sizes = [16, 16], strides = [1, 1]} : vector<16x64xf32> to vector<16x16xf32>
    %cst_54 = arith.constant dense<0.000000e+00> : vector<16x16xf32>
    %123 = tpu.matmul %120, %121, %cst_54 {dimension_numbers = #tpu.dot_dimension_numbers<[1], [1], [0], [0], [0, 0, 1, 0], [], []>} : vector<16x16xf32>, vector<16x16xf32>, vector<16x16xf32> -> vector<16x16xf32>
    %cst_55 = arith.constant 2.500000e-01 : f32
    %124 = vector.broadcast %cst_55 : f32 to vector<16x16xf32>
    %125 = arith.mulf %123, %124 : vector<16x16xf32>
    %126 = vector.broadcast %8 : vector<1x16xf32> to vector<16x16xf32>
    %127 = arith.addf %125, %126 : vector<16x16xf32>
    %cst_56 = arith.constant dense<0xFF800000> : vector<16xf32>
    %128 = vector.multi_reduction <maximumf>, %127, %cst_56 [1] : vector<16x16xf32> to vector<16xf32>
    %129 = vector.shape_cast %128 : vector<16xf32> to vector<16x1xf32>
    %130 = vector.broadcast %129 : vector<16x1xf32> to vector<16x16xf32>
    %131 = arith.subf %127, %130 : vector<16x16xf32>
    %132 = math.exp %131 : vector<16x16xf32>
    %cst_57 = arith.constant dense<0.000000e+00> : vector<16xf32>
    %133 = vector.multi_reduction <add>, %132, %cst_57 [1] : vector<16x16xf32> to vector<16xf32>
    %134 = vector.shape_cast %133 : vector<16xf32> to vector<16x1xf32>
    %135 = vector.broadcast %134 : vector<16x1xf32> to vector<16x16xf32>
    %136 = arith.divf %132, %135 : vector<16x16xf32>
    %137 = vector.broadcast %3 : vector<1x16xf32> to vector<16x16xf32>
    %138 = arith.mulf %136, %137 : vector<16x16xf32>
    %cst_58 = arith.constant dense<0.000000e+00> : vector<16x16xf32>
    %139 = tpu.matmul %138, %122, %cst_58 {dimension_numbers = #tpu.dot_dimension_numbers<[1], [0], [0], [1], [0, 0, 1, 1], [], []>} : vector<16x16xf32>, vector<16x16xf32>, vector<16x16xf32> -> vector<16x16xf32>
    %140 = vector.extract_strided_slice %12 {offsets = [48, 0], sizes = [16, 64], strides = [1, 1]} : vector<64x64xf32> to vector<16x64xf32>
    %cst_59 = arith.constant dense<0.000000e+00> : vector<16x64xf32>
    %141 = tpu.matmul %139, %140, %cst_59 {dimension_numbers = #tpu.dot_dimension_numbers<[1], [0], [0], [1], [0, 0, 1, 1], [], []>} : vector<16x16xf32>, vector<16x64xf32>, vector<16x64xf32> -> vector<16x64xf32>
    %142 = arith.addf %119, %141 : vector<16x64xf32>
    %143 = arith.addf %1, %142 : vector<16x64xf32>
    %144 = vector.broadcast %16 : vector<1x64xf32> to vector<16x64xf32>
    %145 = arith.addf %143, %144 : vector<16x64xf32>
    %c0_60 = arith.constant 0 : index
    %c0_61 = arith.constant 0 : index
    %146 = vector.load %arg13[%c0_60, %c0_61] : memref<1x64xf32, #tpu.memory_space<vmem>>, vector<1x64xf32>
    %c0_62 = arith.constant 0 : index
    %c0_63 = arith.constant 0 : index
    %147 = vector.load %arg14[%c0_62, %c0_63] : memref<1x64xf32, #tpu.memory_space<vmem>>, vector<1x64xf32>
    %cst_64 = arith.constant dense<0.000000e+00> : vector<16xf32>
    %148 = vector.multi_reduction <add>, %145, %cst_64 [1] : vector<16x64xf32> to vector<16xf32>
    %149 = vector.shape_cast %148 : vector<16xf32> to vector<16x1xf32>
    %cst_65 = arith.constant 6.400000e+01 : f32
    %150 = vector.broadcast %cst_65 : f32 to vector<16x1xf32>
    %151 = arith.divf %149, %150 : vector<16x1xf32>
    %152 = arith.mulf %145, %145 : vector<16x64xf32>
    %cst_66 = arith.constant dense<0.000000e+00> : vector<16xf32>
    %153 = vector.multi_reduction <add>, %152, %cst_66 [1] : vector<16x64xf32> to vector<16xf32>
    %154 = vector.shape_cast %153 : vector<16xf32> to vector<16x1xf32>
    %cst_67 = arith.constant 6.400000e+01 : f32
    %155 = vector.broadcast %cst_67 : f32 to vector<16x1xf32>
    %156 = arith.divf %154, %155 : vector<16x1xf32>
    %157 = arith.mulf %151, %151 : vector<16x1xf32>
    %158 = arith.subf %156, %157 : vector<16x1xf32>
    %159 = vector.broadcast %151 : vector<16x1xf32> to vector<16x64xf32>
    %160 = arith.subf %145, %159 : vector<16x64xf32>
    %cst_68 = arith.constant 9.99999974E-6 : f32
    %161 = vector.broadcast %cst_68 : f32 to vector<16x1xf32>
    %162 = arith.addf %158, %161 : vector<16x1xf32>
    %163 = math.rsqrt %162 : vector<16x1xf32>
    %164 = vector.broadcast %163 : vector<16x1xf32> to vector<16x64xf32>
    %165 = arith.mulf %160, %164 : vector<16x64xf32>
    %166 = vector.broadcast %146 : vector<1x64xf32> to vector<16x64xf32>
    %167 = arith.mulf %165, %166 : vector<16x64xf32>
    %168 = vector.broadcast %147 : vector<1x64xf32> to vector<16x64xf32>
    %169 = arith.addf %167, %168 : vector<16x64xf32>
    %c0_69 = arith.constant 0 : index
    %c0_70 = arith.constant 0 : index
    %170 = vector.load %arg15[%c0_69, %c0_70] : memref<64x128xf32, #tpu.memory_space<vmem>>, vector<64x128xf32>
    %cst_71 = arith.constant dense<0.000000e+00> : vector<16x128xf32>
    %171 = tpu.matmul %169, %170, %cst_71 {dimension_numbers = #tpu.dot_dimension_numbers<[1], [0], [0], [1], [0, 0, 1, 1], [], []>} : vector<16x64xf32>, vector<64x128xf32>, vector<16x128xf32> -> vector<16x128xf32>
    %c0_72 = arith.constant 0 : index
    %c0_73 = arith.constant 0 : index
    %172 = vector.load %arg16[%c0_72, %c0_73] : memref<1x128xf32, #tpu.memory_space<vmem>>, vector<1x128xf32>
    %173 = vector.broadcast %172 : vector<1x128xf32> to vector<16x128xf32>
    %174 = arith.addf %171, %173 : vector<16x128xf32>
    %cst_74 = arith.constant 0.000000e+00 : f32
    %175 = vector.broadcast %cst_74 : f32 to vector<16x128xf32>
    %176 = arith.maximumf %174, %175 : vector<16x128xf32>
    %c0_75 = arith.constant 0 : index
    %c0_76 = arith.constant 0 : index
    %177 = vector.load %arg17[%c0_75, %c0_76] : memref<128x64xf32, #tpu.memory_space<vmem>>, vector<128x64xf32>
    %cst_77 = arith.constant dense<0.000000e+00> : vector<16x64xf32>
    %178 = tpu.matmul %176, %177, %cst_77 {dimension_numbers = #tpu.dot_dimension_numbers<[1], [0], [0], [1], [0, 0, 1, 1], [], []>} : vector<16x128xf32>, vector<128x64xf32>, vector<16x64xf32> -> vector<16x64xf32>
    %c0_78 = arith.constant 0 : index
    %c0_79 = arith.constant 0 : index
    %179 = vector.load %arg18[%c0_78, %c0_79] : memref<1x64xf32, #tpu.memory_space<vmem>>, vector<1x64xf32>
    %180 = vector.broadcast %179 : vector<1x64xf32> to vector<16x64xf32>
    %181 = arith.addf %178, %180 : vector<16x64xf32>
    %182 = arith.addf %145, %181 : vector<16x64xf32>
    %c0_80 = arith.constant 0 : index
    %c0_81 = arith.constant 0 : index
    %c0_82 = arith.constant 0 : index
    %183 = vector.load %arg19[%c0_80, %c0_81, %c0_82] : memref<1x16x64xf32, #tpu.memory_space<vmem>>, vector<1x16x64xf32>
    %184 = vector.shape_cast %183 : vector<1x16x64xf32> to vector<16x64xf32>
    %185 = vector.shape_cast %182 : vector<16x64xf32> to vector<1x16x64xf32>
    tpu.vector_store %arg19[%c0_80, %c0_81, %c0_82], %185 {strides = array<i32>} : memref<1x16x64xf32, #tpu.memory_space<vmem>>, vector<1x16x64xf32>,
    %186 = tpu.concatenate %46, %49 in 1 : vector<16x64xf32>, vector<16x64xf32> -> vector<16x128xf32>
    %c0_83 = arith.constant 0 : index
    %c0_84 = arith.constant 0 : index
    %c0_85 = arith.constant 0 : index
    %187 = vector.load %arg20[%c0_83, %c0_84, %c0_85] : memref<1x16x128xf32, #tpu.memory_space<vmem>>, vector<1x16x128xf32>
    %188 = vector.shape_cast %187 : vector<1x16x128xf32> to vector<16x128xf32>
    %189 = vector.shape_cast %186 : vector<16x128xf32> to vector<1x16x128xf32>
    tpu.vector_store %arg20[%c0_83, %c0_84, %c0_85], %189 {strides = array<i32>} : memref<1x16x128xf32, #tpu.memory_space<vmem>>, vector<1x16x128xf32>,
    return
  }
  func.func @transform_0(%arg0: i32) -> (i32, i32, i32) {
    %c0_i32 = arith.constant 0 : i32
    %c0_i32_0 = arith.constant 0 : i32
    %c0_i32_1 = arith.constant 0 : i32
    return %arg0, %c0_i32, %c0_i32_0 : i32, i32, i32
  }
  func.func @transform_1(%arg0: i32) -> (i32, i32, i32) {
    %c0_i32 = arith.constant 0 : i32
    %c0_i32_0 = arith.constant 0 : i32
    %c0_i32_1 = arith.constant 0 : i32
    return %arg0, %c0_i32, %c0_i32_0 : i32, i32, i32
  }
  func.func @transform_2(%arg0: i32) -> (i32, i32) {
    %c0_i32 = arith.constant 0 : i32
    %c0_i32_0 = arith.constant 0 : i32
    %c0_i32_1 = arith.constant 0 : i32
    return %c0_i32, %c0_i32_0 : i32, i32
  }
  func.func @transform_3(%arg0: i32) -> (i32, i32) {
    %c0_i32 = arith.constant 0 : i32
    %c0_i32_0 = arith.constant 0 : i32
    %c0_i32_1 = arith.constant 0 : i32
    return %c0_i32, %c0_i32_0 : i32, i32
  }
  func.func @transform_4(%arg0: i32) -> (i32, i32) {
    %c0_i32 = arith.constant 0 : i32
    %c0_i32_0 = arith.constant 0 : i32
    %c0_i32_1 = arith.constant 0 : i32
    return %c0_i32, %c0_i32_0 : i32, i32
  }
  func.func @transform_5(%arg0: i32) -> (i32, i32) {
    %c0_i32 = arith.constant 0 : i32
    %c0_i32_0 = arith.constant 0 : i32
    %c0_i32_1 = arith.constant 0 : i32
    return %c0_i32, %c0_i32_0 : i32, i32
  }
  func.func @transform_6(%arg0: i32) -> (i32, i32) {
    %c0_i32 = arith.constant 0 : i32
    %c0_i32_0 = arith.constant 0 : i32
    %c0_i32_1 = arith.constant 0 : i32
    return %c0_i32, %c0_i32_0 : i32, i32
  }
  func.func @transform_7(%arg0: i32) -> (i32, i32) {
    %c0_i32 = arith.constant 0 : i32
    %c0_i32_0 = arith.constant 0 : i32
    %c0_i32_1 = arith.constant 0 : i32
    return %c0_i32, %c0_i32_0 : i32, i32
  }
  func.func @transform_8(%arg0: i32) -> (i32, i32) {
    %c0_i32 = arith.constant 0 : i32
    %c0_i32_0 = arith.constant 0 : i32
    %c0_i32_1 = arith.constant 0 : i32
    return %c0_i32, %c0_i32_0 : i32, i32
  }
  func.func @transform_9(%arg0: i32) -> (i32, i32) {
    %c0_i32 = arith.constant 0 : i32
    %c0_i32_0 = arith.constant 0 : i32
    %c0_i32_1 = arith.constant 0 : i32
    return %c0_i32, %c0_i32_0 : i32, i32
  }
  func.func @transform_10(%arg0: i32) -> (i32, i32) {
    %c0_i32 = arith.constant 0 : i32
    %c0_i32_0 = arith.constant 0 : i32
    %c0_i32_1 = arith.constant 0 : i32
    return %c0_i32, %c0_i32_0 : i32, i32
  }
  func.func @transform_11(%arg0: i32) -> (i32, i32) {
    %c0_i32 = arith.constant 0 : i32
    %c0_i32_0 = arith.constant 0 : i32
    %c0_i32_1 = arith.constant 0 : i32
    return %c0_i32, %c0_i32_0 : i32, i32
  }
  func.func @transform_12(%arg0: i32) -> (i32, i32) {
    %c0_i32 = arith.constant 0 : i32
    %c0_i32_0 = arith.constant 0 : i32
    %c0_i32_1 = arith.constant 0 : i32
    return %c0_i32, %c0_i32_0 : i32, i32
  }
  func.func @transform_13(%arg0: i32) -> (i32, i32) {
    %c0_i32 = arith.constant 0 : i32
    %c0_i32_0 = arith.constant 0 : i32
    %c0_i32_1 = arith.constant 0 : i32
    return %c0_i32, %c0_i32_0 : i32, i32
  }
  func.func @transform_14(%arg0: i32) -> (i32, i32) {
    %c0_i32 = arith.constant 0 : i32
    %c0_i32_0 = arith.constant 0 : i32
    %c0_i32_1 = arith.constant 0 : i32
    return %c0_i32, %c0_i32_0 : i32, i32
  }
  func.func @transform_15(%arg0: i32) -> (i32, i32) {
    %c0_i32 = arith.constant 0 : i32
    %c0_i32_0 = arith.constant 0 : i32
    %c0_i32_1 = arith.constant 0 : i32
    return %c0_i32, %c0_i32_0 : i32, i32
  }
  func.func @transform_16(%arg0: i32) -> (i32, i32) {
    %c0_i32 = arith.constant 0 : i32
    %c0_i32_0 = arith.constant 0 : i32
    %c0_i32_1 = arith.constant 0 : i32
    return %c0_i32, %c0_i32_0 : i32, i32
  }
  func.func @transform_17(%arg0: i32) -> (i32, i32) {
    %c0_i32 = arith.constant 0 : i32
    %c0_i32_0 = arith.constant 0 : i32
    %c0_i32_1 = arith.constant 0 : i32
    return %c0_i32, %c0_i32_0 : i32, i32
  }
  func.func @transform_18(%arg0: i32) -> (i32, i32, i32) {
    %c0_i32 = arith.constant 0 : i32
    %c0_i32_0 = arith.constant 0 : i32
    %c0_i32_1 = arith.constant 0 : i32
    return %arg0, %c0_i32, %c0_i32_0 : i32, i32, i32
  }
  func.func @transform_19(%arg0: i32) -> (i32, i32, i32) {
    %c0_i32 = arith.constant 0 : i32
    %c0_i32_0 = arith.constant 0 : i32
    %c0_i32_1 = arith.constant 0 : i32
    return %arg0, %c0_i32, %c0_i32_0 : i32, i32, i32
  }
}

</mosaic_0001>

<bundles_post_ra>
// kernel: tpu_custom_call.1
= control target key start
LH: loop header
LB: loop body
LE: loop exit
PB: predicated region body
PF: predicated region fallthrough
CT: control target
= control target key end

     0   :  { %s4230_s0 = inlined_call_operand.hbm [shape: f32[2,16,64], index: 0, kind: input, shape index: {}]   ;;  %s4231_s1 = inlined_call_operand.vmem [shape: f32[2,1,16], index: 1, kind: input, shape index: {}]   ;;  %s4232_s2 = inlined_call_operand.vmem [shape: f32[1,64], index: 2, kind: input, shape index: {}]   ;;  %s4233_s3 = inlined_call_operand.vmem [shape: f32[1,64], index: 3, kind: input, shape index: {}]   ;;  %s4234_s4 = inlined_call_operand.vmem [shape: f32[64,64], index: 4, kind: input, shape index: {}]   ;;  %s4235_s5 = inlined_call_operand.vmem [shape: f32[1,64], index: 5, kind: input, shape index: {}]   ;;  %s4236_s6 = inlined_call_operand.vmem [shape: f32[64,64], index: 6, kind: input, shape index: {}]   ;;  %s4237_s7 = inlined_call_operand.vmem [shape: f32[1,64], index: 7, kind: input, shape index: {}]   ;;  %s4238_s8 = inlined_call_operand.vmem [shape: f32[64,64], index: 8, kind: input, shape index: {}]   ;;  %s4239_s9 = inlined_call_operand.vmem [shape: f32[1,64], index: 9, kind: input, shape index: {}]   ;;  %s4240_s10 = inlined_call_operand.hbm [shape: f32[64,64], index: 10, kind: input, shape index: {}]   ;;  %s4241_s11 = inlined_call_operand.vmem [shape: f32[1,64], index: 11, kind: input, shape index: {}]   ;;  %s4242_s12 = inlined_call_operand.vmem [shape: f32[1,64], index: 12, kind: input, shape index: {}]   ;;  %s4243_s13 = inlined_call_operand.vmem [shape: f32[1,64], index: 13, kind: input, shape index: {}]   ;;  %s4244_s14 = inlined_call_operand.hbm [shape: f32[64,128], index: 14, kind: input, shape index: {}]   ;;  %s4245_s15 = inlined_call_operand.vmem [shape: f32[1,128], index: 15, kind: input, shape index: {}]   ;;  %s4246_s16 = inlined_call_operand.vmem [shape: f32[128,64], index: 16, kind: input, shape index: {}]   ;;  %s4247_s17 = inlined_call_operand.vmem [shape: f32[1,64], index: 17, kind: input, shape index: {}]   ;;  %s4248_s18 = inlined_call_operand.hbm [shape: f32[2,16,64], index: 18, kind: output, shape index: {0}]   ;;  %s4249_s19 = inlined_call_operand.hbm [shape: f32[2,16,128], index: 19, kind: output, shape index: {1}]  }
   0x1   :  { %4261 = sst [smem:[#allocation17_spill]] %s4230_s0 }
   0x2   :  { %4262 = sst [smem:[#allocation18_spill]] %s4231_s1 }
   0x3   :  { %4263 = sst [smem:[#allocation19_spill]] %s4232_s2 }
   0x4   :  { %4264 = sst [smem:[#allocation20_spill]] %s4233_s3 }
   0x5   :  { %4265 = sst [smem:[#allocation21_spill]] %s4234_s4 }
   0x6   :  { %4266 = sst [smem:[#allocation22_spill]] %s4235_s5 }
   0x7   :  { %4267 = sst [smem:[#allocation23_spill]] %s4236_s6 }
   0x8   :  { %4268 = sst [smem:[#allocation24_spill]] %s4237_s7 }
   0x9   :  { %4269 = sst [smem:[#allocation25_spill]] %s4240_s10 }
   0xa   :  { %4270 = sst [smem:[#allocation26_spill]] %s4243_s13 }
   0xb   :  { %4271 = sst [smem:[#allocation27_spill]] %s4245_s15 }
   0xc   :  { %4272 = sst [smem:[#allocation28_spill]] %s4247_s17 }
   0xd   :  { %4273 = sst [smem:[#allocation29_spill]] %s4248_s18 }
   0xe   :  { %4274 = sst [smem:[#allocation30_spill]] %s4249_s19 }
   0xf   :  { %25 = vsyncpa [#allocation3], 0 }
  0x10   :  { %27 = vsyncpa [#allocation3 + $0x1], 0 }
  0x11   :  { %28 = vsyncpa [#allocation6], 0 }
  0x12   :  { %29 = vsyncpa [#allocation4], 0 }
  0x13   :  { %31 = vsyncpa [#allocation4 + $0x1], 0 }
  0x14   :  { %32 = vsyncpa [#allocation10], 0 }
  0x15   :  { %34 = vsyncpa [#allocation10 + $0x1], 0  ;;  %s3597_s0 = smov 0   ;;  %s3599_s30 = smov 0  }
  0x16   :  { %s3601_s20 = smov 0   ;;  %s3603_s21 = smov 0  }
  0x17 LB: > { %4275 = sst [smem:[#allocation15_spill]] %s3469_s0  ;;  %s3618_s1 = sadd.s32 4294967295, %s3481_s21   ;;  %s3481_s21 = sphi %s3603_s21, %s4315_s21   ;;  %s3477_s20 = sphi %s3601_s20, %s4314_s20   ;;  %s3473_s30 = sphi %s3599_s30, %s4313_s30   ;;  %s3469_s0 = sphi %s3597_s0, %s4312_s0  }
  0x18   : > { %s2608_s22 = sadd.s32 4294967294, %s3481_s21   ;;  %p60_p0 = scmp.ne.s32.totalorder %s3473_s30, %s3469_s0 }
  0x19   : > { %p4254_p1 = scmp.eq.s32.totalorder %s3618_s1, 0  ;;  %p452_p3 = scmp.eq.s32.totalorder %s2608_s22, 1 }
  0x1a   : > { %p2609_p5 = scmp.ge.s32.totalorder %s3481_s21, 1  ;;  %p485_p7 = scmp.lt.s32.totalorder %s3481_s21, 3 }
  0x1b   : > { %p3627_p4 = por %p4254_p1, %p60_p0  ;;  %p3632_p6 = por %p452_p3, %p60_p0 }
  0x1c   : > { %p3637_p8 = pnand %p2609_p5, %p485_p7  ;;  %s3483_s25 = smov [#allocation5]  }
  0x1d   : > { %s4276_s2 = scalar_select %p3627_p4, 1, 0 }
  0x1e   : > { %s4277_s23 = scalar_select %p3632_p6, 1, 0 }
  0x1f   : > { %s521_s3 = sshll.u32 %s3483_s25, 4  ;;  %p3156_p9 = pneg %p3637_p8  ;;  %s3641_s3 = int_to_ptr.vmem [resolvable:$true] %s521_s3 }
  0x20   : > { %4278 = sst [smem:[#allocation16_spill]] %s4277_s23  ;;  %s3484_s27 = smov [#allocation7]  }
  0x21   : > { %p3648_p11 = pnand %p3156_p9, %p4254_p1  ;;  %s543_s28 = sshll.u32 %s3484_s27, 4  ;;  %s3652_s28 = int_to_ptr.vmem [resolvable:$true] %s543_s28 }
  0x22   : > { %s4281_s10 = sld [smem:[#allocation25_spill]] }
  0x23   : > { %p3295_p13 = pneg %p3648_p11 }
  0x28   : > { %s3293_s25 = scalar_lea.hbm %s4281_s10, 1024 }
  0x29   : > { %p3294_p12 = scmp.ne.s32.totalorder %s4281_s10, %s3293_s25  ;;  %p3300_p5 = scmp.lt.u32.totalorder %s3293_s25, %s4281_s10 }
  0x2b   : > { %p3296_p0 = pnand %p3295_p13, %p3294_p12 }
  0x2d   : > { %p3297_p3 = pneg %p3296_p0 }
  0x2f   : > { %p3302_p7 = pnand %p3300_p5, %p3297_p3 }
  0x31   : > { %3305 = shalt.err (!%p3302_p7)
}
  0x32   : > { %s3306_s27 = scalar_lea.vmem %s3641_s3, 1024  ;;  %p3314_p2 = scmp.lt.s32.totalorder %s3641_s3, %s3641_s3 }
  0x33   : > { %p3307_p9 = scmp.ne.s32.totalorder %s3641_s3, %s3306_s27  ;;  %p3315_p12 = scmp.lt.s32.totalorder %s3306_s27, %s3306_s27 }
  0x35   : > { %p3309_p10 = pnand %p3307_p9, %p3295_p13  ;;  %p3316_p0 = por %p3315_p12, %p3314_p2 }
  0x37   : > { %p3310_p1 = pneg %p3309_p10 }
  0x39   : > { %p3317_p6 = pnand %p3316_p0, %p3310_p1 }
  0x3b   : > { %3320 = shalt.err (!%p3317_p6)
}
  0x3c   : > { %s4256_s17 = smov 128   ;;  %s4257_s18 = smov 8  }
  0x3d   : > { %3159 = dma.hbm_to_vmem [thread:$0]  (!%p3648_p11), %s4281_s10, 1024, %s3641_s3, [#allocation6], %s4256_s17, %s4256_s17, %s4257_s18  }
  0x3e   : > { %s3321_s25 = scalar_lea.hbm %s4244_s14, 1024 }
  0x3f   : > { %p3322_p1 = scmp.ne.s32.totalorder %s4244_s14, %s3321_s25  ;;  %p3328_p10 = scmp.lt.u32.totalorder %s3321_s25, %s4244_s14 }
  0x41   : > { %p3324_p2 = pnand %p3322_p1, %p3295_p13 }
  0x43   : > { %p3325_p6 = pneg %p3324_p2 }
  0x45   : > { %p3330_p3 = pnand %p3328_p10, %p3325_p6 }
  0x47   : > { %3333 = shalt.err (!%p3330_p3)
}
  0x48   : > { %s3334_s3 = scalar_lea.vmem %s3652_s28, 1024  ;;  %p3342_p12 = scmp.lt.s32.totalorder %s3652_s28, %s3652_s28 }
  0x49   : > { %p3335_p5 = scmp.ne.s32.totalorder %s3652_s28, %s3334_s3  ;;  %p3343_p0 = scmp.lt.s32.totalorder %s3334_s3, %s3334_s3 }
  0x4b   : > { %p3337_p7 = pnand %p3335_p5, %p3295_p13  ;;  %p3344_p1 = por %p3343_p0, %p3342_p12 }
  0x4d   : > { %p3338_p9 = pneg %p3337_p7 }
  0x4f   : > { %p3345_p2 = pnand %p3344_p1, %p3338_p9 }
  0x51   : > { %3348 = shalt.err (!%p3345_p2)
}
  0x52   : > { %3162 = dma.hbm_to_vmem [thread:$0]  (!%p3648_p11), %s4244_s14, 1024, %s3652_s28, [#allocation6], %s4256_s17, %s4256_s17, %s4257_s18  }
  0x53   : > { %s3713_s19 = sadd.s32 1, %s3481_s21   ;;  %s47_s26 = sadd.s32 1, %s3477_s20 }
  0x54   : > { %s44_s0 = ssub.s32 %s3481_s21, %s3713_s19  ;;  %p54_p13 = scmp.ne.s32.totalorder %s3477_s20, %s3473_s30 }
  0x55   : > { %p45_p6 = scmp.eq.s32.totalorder %s44_s0, 0  ;;  %p55_p10 = scmp.eq.s32.totalorder %s3481_s21, 0 }
  0x56   : > { %p4282_p3 = scmp.eq.s32.totalorder %s3618_s1, 1  ;;  %p3176_p7 = scmp.lt.s32.totalorder %s3481_s21, 2 }
  0x57   : > { %s3729_s29 = scalar_select %p45_p6, %s3477_s20, %s47_s26  }
  0x58   : > { %p3723_p5 = por %p4282_p3, %p54_p13  ;;  %p56_p9 = por %p55_p10, %p54_p13 }
  0x59   : > { %s566_s22 = sand.u32 1, %s3477_s20   ;;  %s2680_s28 = sshll.u32 %s3481_s21, 8 }
  0x5a   : > { %s4283_s23 = scalar_select %p3723_p5, 1, 0 }
  0x5b   : > { %s2613_s25 = sshll.u32 %s566_s22, 4  ;;  %s4284_s13 = sld [smem:[#allocation17_spill]] }
  0x5c   : > { %s570_s0 = scalar_lea.vmem [#allocation2], %s2613_s25  ;;  %p3740_p11 = pnand %p3176_p7, %p56_p9 }
  0x5d   : > { %s577_s17 = sshll.u32 %s570_s0, 4  ;;  %s3744_s18 = scalar_lea.sflag [#allocation3], %s566_s22  ;;  %s3738_s17 = int_to_ptr.vmem [resolvable:$true] %s577_s17 }
  0x5e   : > { %p3351_p0 = pneg %p3740_p11 }
  0x61   : > { %s3736_s15 = scalar_lea.hbm %s4284_s13, %s2680_s28  ;;  %s3354_s27 = scalar_lea.hbm %s4284_s13, 512 }
  0x62   : > { %s3349_s10 = scalar_lea.hbm %s3736_s15, 256  ;;  %p3355_p13 = scmp.lt.u32.totalorder %s3736_s15, %s4284_s13 }
  0x63   : > { %p3350_p12 = scmp.ne.s32.totalorder %s3736_s15, %s3349_s10  ;;  %p3356_p6 = scmp.lt.u32.totalorder %s3354_s27, %s3349_s10 }
  0x64   : > { %p3358_p3 = scmp.lt.u32.totalorder %s3349_s10, %s3736_s15 }
  0x65   : > { %p3352_p1 = pnand %p3351_p0, %p3350_p12  ;;  %p3357_p10 = por %p3356_p6, %p3355_p13 }
  0x67   : > { %p3353_p2 = pneg %p3352_p1  ;;  %p3359_p7 = por %p3358_p3, %p3357_p10 }
  0x69   : > { %p3360_p9 = pnand %p3359_p7, %p3353_p2 }
  0x6b   : > { %3363 = shalt.err (!%p3360_p9)
}
  0x6c   : > { %s3364_s22 = scalar_lea.vmem %s3738_s17, 256  ;;  %s3487_s25 = smov [#allocation2]  }
  0x6d   : > { %p3365_p12 = scmp.ne.s32.totalorder %s3738_s17, %s3364_s22  ;;  %s3369_s28 = sshll.u32 %s3487_s25, 4  ;;  %s3370_s28 = int_to_ptr.vmem [resolvable:$false] %s3369_s28 }
  0x6e   : > { %s3371_s3 = scalar_lea.vmem %s3370_s28, 512  ;;  %p3372_p4 = scmp.lt.s32.totalorder %s3738_s17, %s3370_s28 }
  0x6f   : > { %p3367_p1 = pnand %p3365_p12, %p3351_p0  ;;  %p3373_p13 = scmp.lt.s32.totalorder %s3371_s3, %s3364_s22 }
  0x71   : > { %p3368_p5 = pneg %p3367_p1  ;;  %p3374_p6 = por %p3373_p13, %p3372_p4 }
  0x73   : > { %p3375_p10 = pnand %p3374_p6, %p3368_p5 }
  0x75   : > { %3378 = shalt.err (!%p3375_p10)
}
  0x76   : > { %s4286_s10 = smov 8   ;;  %s4287_s27 = smov 128  }
  0x77   : > { %3166 = dma.hbm_to_vmem [thread:$0]  (!%p3740_p11), %s3736_s15, 256, %s3738_s17, %s3744_s18, %s4287_s27, %s4287_s27, %s4286_s10  }
  0x78   : > { %595 = sbr.rel (%p3637_p8) target bundleno = 2798 (0xaee), region = 92  ;;  %s3778_s0 = sand.u32 (!%p3637_p8), 1, %s3473_s30  }
  0x79   : > { %s3781_s22 = sshll.u32 (!%p3637_p8), %s3778_s0, 4  ;;  %s598_s26 = scalar_lea.sflag (!%p3637_p8), [#allocation3], %s3778_s0 }
  0x7a   : > { %s601_s25 = scalar_lea.vmem (!%p3637_p8), [#allocation2], %s3781_s22  ;;  %p4288_p4 = scmp.ne.s32.totalorder (!%p3637_p8), %s4276_s2, 0 }
  0x7f   : > { %3452 = dma.done.wait (%p4288_p4), %s598_s26, 256  }
  0x80   : > { %3454 = vsyncadd (%p4288_p4), %s598_s26, 4294967040  ;;  %p4289_p5 = scmp.eq.s32.totalorder %s3618_s1, 0 }
  0x82   : > { %3456 = dma.done.wait (%p4289_p5), [#allocation6], 2048   ;;  %p4290_p8 = pmov %p4289_p5 }
  0x83   : > { %vm718_vm0 = vcmask 523264   ;;  %v3793_v0 = vld [vmem:[%s601_s25] sm:$0xff]  ;;  %v3795_v1 = vld [vmem:[%s601_s25 + $0x8] sm:$0xff]  ;;  %s4291_s4 = sld [smem:[#allocation21_spill]]  ;;  %s4292_s6 = sld [smem:[#allocation23_spill]]  ;;  %vm1015_vm1 = vcmask 130048  }
  0x84   : > { %3458 = vsyncadd (%p4290_p8), [#allocation6], 4294965248  ;;  %v719_v2 = vsel %vm718_vm0, %v3793_v0, 0.0  ;;  %v728_v3 = vmul.f32 %v3793_v0, %v3793_v0  ;;  %v729_v4 = vmul.f32 %v3795_v1, %v3795_v1  ;;  %v722_v6 = vsel %vm718_vm0, %v3795_v1, 0.0  ;;  %v696_v11 = vld [vmem:[%s4238_s8] sm:$0xff]  ;;  %v697_v12 = vld [vmem:[%s4238_s8 + $0x8] sm:$0xff] }
  0x85   : > { %720 = vadd.xlane.f32.xlu0 %v719_v2  ;;  %v3016_v13 = vpack.c.bf16 %v697_v12, %v696_v11  ;;  %v698_v16 = vld [vmem:[%s4238_s8 + $0x10] sm:$0xff]  ;;  %v699_v18 = vld [vmem:[%s4238_s8 + $0x18] sm:$0xff]  ;;  %v700_v23 = vld [vmem:[%s4238_s8 + $0x20] sm:$0xff]  ;;  %s4293_s28 = sld [smem:[#allocation19_spill]]  ;;  %s4294_s27 = sld [smem:[#allocation20_spill]] }
  0x86   : > { %v730_v5 = vsel %vm718_vm0, %v728_v3, 0.0  ;;  %v733_v7 = vsel %vm718_vm0, %v729_v4, 0.0  ;;  %v3020_v21 = vpack.c.bf16 %v699_v18, %v698_v16  ;;  %v701_v24 = vld [vmem:[%s4238_s8 + $0x28] sm:$0xff]  ;;  %v702_v29 = vld [vmem:[%s4238_s8 + $0x30] sm:$0xff]  ;;  %v703_v30 = vld [vmem:[%s4238_s8 + $0x38] sm:$0xff]  ;;  %s4295_s5 = sld [smem:[#allocation22_spill]] }
  0x87   : > { %731 = vadd.xlane.f32.xlu1 %v730_v5  ;;  %3017 = vmatprep.subr.bf16.mxu0 %v3016_v13  ;;  %v3024_v25 = vpack.c.bf16 %v701_v24, %v700_v23  ;;  %v3028_v31 = vpack.c.bf16 %v703_v30, %v702_v29  ;;  %s3488_s18 = smov 112   ;;  %s4296_s7 = sld [smem:[#allocation24_spill]]  ;;  %vm3924_vm2 = vmpackc.low %vm1015_vm1, %vm1015_vm1 }
  0x88   : > { %3019 = vmatpush3.bf16.msra.mxu0 %v3016_v13  ;;  %s3489_s3 = smov 96   ;;  %p672_p11 = scmp.lt.s32.totalorder %s3618_s1, 1 }
  0x89   : > { %723 = vadd.xlane.f32.xlu0 %v722_v6  ;;  %v680_v8 = vld [vmem:[%s4291_s4] sm:$0xff]  ;;  %v681_v9 = vld [vmem:[%s4291_s4 + $0x8] sm:$0xff]  ;;  %v682_v14 = vld [vmem:[%s4291_s4 + $0x10] sm:$0xff]  ;;  %3021 = vmatprep.subr.bf16.mxu0 %v3020_v21  ;;  %s4299_s25 = sld [smem:[#allocation18_spill]]  ;;  %s3491_s24 = smov 80  }
  0x8a   : > { %v2984_v10 = vpack.c.bf16 %v681_v9, %v680_v8  ;;  %v683_v15 = vld [vmem:[%s4291_s4 + $0x18] sm:$0xff]  ;;  %v684_v19 = vld [vmem:[%s4291_s4 + $0x20] sm:$0xff]  ;;  %v685_v20 = vld [vmem:[%s4291_s4 + $0x28] sm:$0xff]  ;;  %s673_s10 = scalar_select %p672_p11, %s3618_s1, 1 }
  0x8b   : > { %734 = vadd.xlane.f32.xlu1 %v733_v7  ;;  %v2988_v17 = vpack.c.bf16 %v683_v15, %v682_v14  ;;  %v2992_v22 = vpack.c.bf16 %v685_v20, %v684_v19  ;;  %v686_v26 = vld [vmem:[%s4291_s4 + $0x30] sm:$0xff]  ;;  %v687_v27 = vld [vmem:[%s4291_s4 + $0x38] sm:$0xff]  ;;  %v688_v32 = vld [vmem:[%s4292_s6] sm:$0xff]  ;;  %s3492_s15 = smov 64   ;;  %s4301_s17 = sld [smem:[#allocation27_spill]] }
  0x8c   : > { %2985 = vmatprep.subr.bf16.mxu1 %v2984_v10  ;;  %3023 = vmatpush3.bf16.msra.mxu0 %v3020_v21  ;;  %v2996_v28 = vpack.c.bf16 %v687_v27, %v686_v26  ;;  %v689_v33 = vld [vmem:[%s4292_s6 + $0x8] sm:$0xff]  ;;  %v2622_v51 = vld [vmem:[%s4293_s28] ss:$0 sm:$0xff]  ;;  %v690_v59 = vld [vmem:[%s4292_s6 + $0x10] sm:$0xff]  ;;  %v1106_v27 = vlaneseq  ;;  %s4300_s28 = sld [smem:[#allocation26_spill]]  ;;  %p4303_p2 = scmp.ne.s32.totalorder %s4283_s23, 0 }
  0x8d   : > { %2987 = vmatpush3.bf16.msra.mxu1 %v2984_v10  ;;  %3025 = vmatprep.subr.bf16.mxu0 %v3024_v25  ;;  %v3000_v34 = vpack.c.bf16 %v689_v33, %v688_v32  ;;  %v2623_v53 = vld [vmem:[%s4294_s27] ss:$0 sm:$0xff]  ;;  %v691_v60 = vld [vmem:[%s4292_s6 + $0x18] sm:$0xff]  ;;  %v693_v3 = vld [vmem:[%s4292_s6 + $0x28] sm:$0xff] }
  0x8e   : > { %2989 = vmatprep.subr.bf16.mxu1 %v2988_v17  ;;  %v3004_v63 = vpack.c.bf16 %v691_v60, %v690_v59  ;;  %v692_v2 = vld [vmem:[%s4292_s6 + $0x20] sm:$0xff]  ;;  %v694_v5 = vld [vmem:[%s4292_s6 + $0x30] sm:$0xff]  ;;  %v695_v6 = vld [vmem:[%s4292_s6 + $0x38] sm:$0xff] }
  0x8f   : > { %v3008_v4 = vpack.c.bf16 %v693_v3, %v692_v2  ;;  %v3012_v7 = vpack.c.bf16 %v695_v6, %v694_v5  ;;  %v2630_v8 = vld [vmem:[%s4239_s9] ss:$0 sm:$0xff]  ;;  %s674_s2 = scalar_lea.vmem %s4299_s25, %s673_s10  ;;  %s4302_s10 = sld [smem:[#allocation30_spill]] }
  0x90   : > { %3027 = vmatpush3.bf16.msra.mxu0 %v3024_v25  ;;  %v2624_v9 = vld [vmem:[%s4295_s5] ss:$0 sm:$0xff] }
  0x91   : > { %2991 = vmatpush3.bf16.msra.mxu1 %v2988_v17  ;;  %3029 = vmatprep.subr.bf16.mxu0 %v3028_v31  ;;  %v2627_v19 = vld [vmem:[%s4296_s7] ss:$0 sm:$0xff] }
  0x92   : > { %2993 = vmatprep.subr.bf16.mxu1 %v2992_v22  ;;  %v677_v30 = vld [vmem:[%s674_s2] sm:$0x1]  ;;  %s4105_s2 = scalar_lea.vmem [#allocation9], %s3781_s22 }
  0x93   : > { %vm678_vm3 = vcmp.gt.f32.partialorder %v677_v30, 0.5 }
  0x94   : > { %3031 = vmatpush3.bf16.msra.mxu0 %v3028_v31 }
  0x95   : > { %2995 = vmatpush3.bf16.msra.mxu1 %v2992_v22 }
  0x96   : > { %2997 = vmatprep.subr.bf16.mxu1 %v2996_v28 }
  0x99   : > { %2999 = vmatpush3.bf16.msra.mxu1 %v2996_v28  ;;  %v1107_v28 = vshrl.u32 %v1106_v27, 7 }
  0x9a   : > { %3001 = vmatprep.subr.bf16.mxu1 %v3000_v34 }
  0x9b   : > { %v1108_v29 = vsub.s32 0, %v1107_v28 }
  0x9d   : > { %v3953_v32 = vrot.slane %v677_v30, %v1108_v29 }
 0x112   : > { %v721_v35 = vpop.xlane.xlu0 %720 }
 0x113   : > { %v726_v36 = vmul.f32 0.015625, %v721_v35 }
 0x114   : > { %v732_v37 = vpop.xlane.xlu1 %731 }
 0x115   : > { %v738_v38 = vmul.f32 %v726_v36, %v726_v36  ;;  %v736_v39 = vmul.f32 0.015625, %v732_v37  ;;  %v742_v49 = vsub.f32 %v3793_v0, %v726_v36 }
 0x116   : > { %v724_v40 = vpop.xlane.xlu0 %723 }
 0x117   : > { %v740_v41 = vsub.f32 %v736_v39, %v738_v38  ;;  %v727_v42 = vmul.f32 0.015625, %v724_v40 }
 0x118   : > { %v735_v43 = vpop.xlane.xlu1 %734 }
 0x119   : > { %v744_v44 = vadd.f32 1e-05, %v740_v41  ;;  %v739_v45 = vmul.f32 %v727_v42, %v727_v42  ;;  %v737_v46 = vmul.f32 0.015625, %v735_v43  ;;  %v743_v54 = vsub.f32 %v3795_v1, %v727_v42 }
 0x11b   : > { %3253 = vrsqrt.f32 %v744_v44  ;;  %v741_v47 = vsub.f32 %v737_v46, %v739_v45  ;;  %v3490_v44 = vmov -1e+30  }
 0x11c   : > { %v679_v45 = vsel %vm678_vm3, 0.0, %v3490_v44 }
 0x11d   : > { %v745_v48 = vadd.f32 1e-05, %v741_v47  ;;  %v3967_v46 = vrot.slane %v679_v45, %v1108_v29 }
 0x11f   : > { %3255 = vrsqrt.f32 %v745_v48 }
 0x125   : > { %v3254_v50 = vpop.eup %3253 }
 0x126   : > { %v748_v52 = vmul.f32 %v3254_v50, %v742_v49 }
 0x128   : > { %v756_v55 = vmul.f32 %v2622_v51, %v748_v52 }
 0x129   : > { %v3256_v56 = vpop.eup %3255 }
 0x12a   : > { %v749_v57 = vmul.f32 %v3256_v56, %v743_v54  ;;  %v764_v58 = vadd.f32 %v2623_v53, %v756_v55 }
 0x12c   : > { %v757_v61 = vmul.f32 %v2622_v51, %v749_v57  ;;  %2805 = vmatprep.mubr.msk.f32.mxu1 %vm718_vm0, %v764_v58  ;;  %2843 = vmatprep.mubr.msk.f32.mxu0 %vm718_vm0, %v764_v58 }
 0x12e   : > { %v765_v62 = vadd.f32 %v2623_v53, %v757_v61 }
 0x130   : > { %2806 = vmatmul.mubr.msk.f32.vlgmr.msra.gmra.mrb[0].mxu1 %vm718_vm0, %v765_v62  ;;  %2844 = vmatmul.mubr.msk.f32.vlgmr.msra.gmra.mrb[0].mxu0 %vm718_vm0, %v765_v62 }
 0x131   : > { %3003 = vmatpush3.bf16.msra.mxu1 %v3000_v34  ;;  %2824 = vmatprep.mubr.msk.f32.mxu1 %vm718_vm0, %v764_v58 }
 0x132   : > { %3005 = vmatprep.subr.bf16.mxu1 %v3004_v63 }
 0x135   : > { %3007 = vmatpush3.bf16.msra.mxu1 %v3004_v63 }
 0x136   : > { %3009 = vmatprep.subr.bf16.mxu1 %v3008_v4 }
 0x139   : > { %3011 = vmatpush3.bf16.msra.mxu1 %v3008_v4 }
 0x13a   : > { %3013 = vmatprep.subr.bf16.mxu1 %v3012_v7 }
 0x13d   : > { %3015 = vmatpush3.bf16.msra.mxu1 %v3012_v7 }
 0x140   : > { %2825 = vmatmul.mubr.msk.f32.vlgmr.msra.gmra.mrb[2].mxu1 %vm718_vm0, %v765_v62 }
 0x203   : > { %v2807_v10 = vpop.f32.mrb[0].mxu1  ;;  %v2845_v11 = vpop.f32.mrb[0].mxu0 }
 0x204   : > { %v3899_v12 = vadd.f32 %v2845_v11, %v2630_v8  ;;  %v844_v13 = vpop.f32.mrb[1].mxu1  ;;  %v1006_v14 = vpop.f32.mrb[1].mxu0  ;;  %v3911_v18 = vadd.f32 %v2807_v10, %v2624_v9 }
 0x205   : > { %v3901_v15 = vadd.f32 %v2624_v9, %v844_v13  ;;  %v3903_v16 = vadd.f32 %v2630_v8, %v1006_v14 }
 0x207   : > { %1224 = vrot.lane.b32.xlu1 %v3901_v15, %s3488_s18  ;;  %2850 = vmatprep.mubr.msk.f32.mxu1 %vm1015_vm1, %v3901_v15  ;;  %v3038_v17 = vpack.c.bf16 %v3899_v12, %v3903_v16 }
 0x209   : > { %3039 = vmatprep.subr.bf16.mxu0 %v3038_v17 }
 0x20a   : > { %3041 = vmatpush3.bf16.msra.mxu0 %v3038_v17 }
 0x20b   : > { %1226 = vrot.lane.b32.xlu1 %v3911_v18, %s3488_s18 }
 0x213   : > { %v2826_v20 = vpop.f32.mrb[2].mxu1 }
 0x214   : > { %v3918_v21 = vadd.f32 %v2826_v20, %v2627_v19  ;;  %v925_v22 = vpop.f32.mrb[3].mxu1 }
 0x215   : > { %v3920_v23 = vadd.f32 %v2627_v19, %v925_v22 }
 0x217   : > { %v3930_v25 = vpack.i.bf16 %v3918_v21, %v3920_v23  ;;  %v3032_v26 = vpack.c.bf16 %v3918_v21, %v3920_v23 }
 0x219   : > { %3224 = vrot.lane.b32.xlu0 %v3930_v25, %s3488_s18  ;;  %3034 = vmatprep.subr.msk.bf16.mxu1 %vm3924_vm2, %v3032_v26 }
 0x21a   : > { %3229 = vrot.lane.b32.xlu1 %v3930_v25, %s3489_s3  ;;  %3037 = vmatpush3.bf16.xpose.msk.msra.mxu1 %vm3924_vm2, %v3032_v26 }
 0x21d   : > { %1594 = vrot.lane.b32.xlu0 %v3901_v15, %s3489_s3 }
 0x21e   : > { %1596 = vrot.lane.b32.xlu1 %v3911_v18, %s3489_s3 }
 0x221   : > { %2851 = vmatmul.mubr.msk.f32.vlgmr.msra.gmra.mrb[4].mxu1 %vm1015_vm1, %v3911_v18 }
 0x279   : > { %v1225_v31 = vpop.permute.xlu1 %1224 }
 0x27a   : > { %2864 = vmatprep.mubr.msk.f32.mxu1 %vm1015_vm1, %v1225_v31  ;;  %v3983_v31 = vpack.i.bf16 %v3899_v12, %v3903_v16 }
 0x27d   : > { %v1227_v33 = vpop.permute.xlu1 %1226 }
 0x28b   : > { %v3225_v34 = vpop.permute.xlu0 %3224 }
 0x28c   : > { %v3227_v35 = vunpack.i.h.bf16 %v3225_v34  ;;  %v3226_v36 = vunpack.i.l.bf16 %v3225_v34  ;;  %v3230_v37 = vpop.permute.xlu1 %3229 }
 0x28d   : > { %v3232_v38 = vunpack.i.h.bf16 %v3230_v37  ;;  %v3231_v39 = vunpack.i.l.bf16 %v3230_v37 }
 0x28e   : > { %v3042_v40 = vpack.c.bf16 %v3227_v35, %v3226_v36 }
 0x28f   : > { %v3060_v41 = vpack.c.bf16 %v3232_v38, %v3231_v39  ;;  %v1595_v42 = vpop.permute.xlu0 %1594 }
 0x290   : > { %3044 = vmatprep.subr.msk.bf16.mxu1 %vm3924_vm2, %v3042_v40  ;;  %v1597_v43 = vpop.permute.xlu1 %1596 }
 0x291   : > { %3047 = vmatpush3.bf16.xpose.msk.msra.mxu1 %vm3924_vm2, %v3042_v40 }
 0x292   : > { %3062 = vmatprep.subr.msk.bf16.mxu1 %vm3924_vm2, %v3060_v41 }
 0x298   : > { %2865 = vmatmul.mubr.msk.f32.vlgmr.msra.gmra.mrb[6].mxu1 %vm1015_vm1, %v1227_v33 }
 0x299   : > { %3065 = vmatpush3.bf16.xpose.msk.msra.mxu1 %vm3924_vm2, %v3060_v41  ;;  %2892 = vmatprep.mubr.msk.f32.mxu1 %vm1015_vm1, %v1595_v42 }
 0x2a0   : > { %2893 = vmatmul.mubr.msk.f32.vlgmr.msra.gmra.mrb[8].mxu1 %vm1015_vm1, %v1597_v43 }
 0x2f4   : > { %v2852_v47 = vpop.f32.mrb[4].mxu1 }
 0x2f5   : > { %v1104_v48 = vmul.f32 0.25, %v2852_v47  ;;  %v1094_v49 = vpop.f32.mrb[5].mxu1 }
 0x2f6   : > { %v1103_v50 = vmul.f32 0.25, %v1094_v49 }
 0x2f7   : > { %v1112_v51 = vadd.f32 %v3967_v46, %v1104_v48 }
 0x2f8   : > { %v1111_v52 = vadd.f32 %v3967_v46, %v1103_v50 }
 0x2f9   : > { %v1116_v53 = vsel %vm1015_vm1, %v1112_v51, -inf }
 0x2fa   : > { %1117 = vmax.xlane.f32.xlu1 %v1116_v53  ;;  %v1113_v54 = vsel %vm1015_vm1, %v1111_v52, -inf }
 0x2fb   : > { %1114 = vmax.xlane.f32.xlu0 %v1113_v54 }
 0x36b   : > { %v2866_v55 = vpop.f32.mrb[6].mxu1 }
 0x36c   : > { %v1306_v56 = vpop.f32.mrb[7].mxu1  ;;  %v1316_v57 = vmul.f32 0.25, %v2866_v55 }
 0x36d   : > { %v1315_v58 = vmul.f32 0.25, %v1306_v56 }
 0x36e   : > { %v1318_v61 = vadd.f32 %v1316_v57, %v3967_v46 }
 0x36f   : > { %v1317_v59 = vadd.f32 %v1315_v58, %v3967_v46 }
 0x370   : > { %v1322_v2 = vsel %vm1015_vm1, %v1318_v61, -inf }
 0x371   : > { %v1319_v60 = vsel %vm1015_vm1, %v1317_v59, -inf }
 0x372   : > { %1320 = vmax.xlane.f32.xlu0 %v1319_v60 }
 0x373   : > { %v2894_v62 = vpop.f32.mrb[8].mxu1 }
 0x374   : > { %v1676_v63 = vpop.f32.mrb[9].mxu1  ;;  %v1686_v42 = vmul.f32 0.25, %v2894_v62 }
 0x375   : > { %v1685_v40 = vmul.f32 0.25, %v1676_v63 }
 0x376   : > { %1323 = vmax.xlane.f32.xlu0 %v1322_v2 }
 0x377   : > { %v1687_v41 = vadd.f32 %v1685_v40, %v3967_v46 }
 0x387   : > { %v1118_v3 = vpop.xlane.xlu1 %1117 }
 0x388   : > { %v1120_v4 = vsub.f32 %v1112_v51, %v1118_v3  ;;  %v1115_v5 = vpop.xlane.xlu0 %1114 }
 0x389   : > { %v1119_v6 = vsub.f32 %v1111_v52, %v1115_v5 }
 0x38a   : > { %v1123_v7 = vmul.f32 1.442695, %v1120_v4 }
 0x38b   : > { %v1121_v8 = vmul.f32 1.442695, %v1119_v6 }
 0x38c   : > { %3257 = vpow2.f32 %v1123_v7 }
 0x38d   : > { %3259 = vpow2.f32 %v1121_v8 }
 0x396   : > { %v3258_v9 = vpop.eup %3257 }
 0x397   : > { %v3260_v10 = vpop.eup %3259  ;;  %v1128_v11 = vsel %vm1015_vm1, %v3258_v9, 0.0 }
 0x398   : > { %1129 = vadd.xlane.f32.xlu1 %v1128_v11  ;;  %v1125_v13 = vsel %vm1015_vm1, %v3260_v10, 0.0  ;;  %v707_v11 = vld [vmem:[#allocation5 + $0x18] sm:$0xff] }
 0x399   : > { %1126 = vadd.xlane.f32.xlu0 %v1125_v13 }
 0x3ff   : > { %v1321_v14 = vpop.xlane.xlu0 %1320 }
 0x400   : > { %v1325_v17 = vsub.f32 %v1317_v59, %v1321_v14  ;;  %v704_v14 = vld [vmem:[#allocation5] sm:$0xff] }
 0x402   : > { %v1327_v19 = vmul.f32 1.442695, %v1325_v17  ;;  %v705_v17 = vld [vmem:[#allocation5 + $0x8] sm:$0xff] }
 0x403   : > { %v1324_v20 = vpop.xlane.xlu0 %1323 }
 0x404   : > { %3261 = vpow2.f32 %v1327_v19  ;;  %v1326_v22 = vsub.f32 %v1318_v61, %v1324_v20  ;;  %v3056_v19 = vpack.c.bf16 %v705_v17, %v704_v14 }
 0x406   : > { %v1329_v26 = vmul.f32 1.442695, %v1326_v22 }
 0x408   : > { %3263 = vpow2.f32 %v1329_v26 }
 0x40e   : > { %v3262_v27 = vpop.eup %3261 }
 0x40f   : > { %v1331_v28 = vsel %vm1015_vm1, %v3262_v27, 0.0 }
 0x410   : > { %1332 = vadd.xlane.f32.xlu0 %v1331_v28 }
 0x412   : > { %v3264_v29 = vpop.eup %3263 }
 0x413   : > { %v1334_v30 = vsel %vm1015_vm1, %v3264_v29, 0.0 }
 0x414   : > { %1335 = vadd.xlane.f32.xlu1 %v1334_v30 }
 0x425   : > { %v1130_v33 = vpop.xlane.xlu1 %1129  ;;  %3239 = vrot.lane.b32.xlu1 %v3930_v25, %s3491_s24 }
 0x426   : > { %3265 = vrcp.f32 %v1130_v33  ;;  %3234 = vrot.lane.b32.xlu0 %v3983_v31, %s3488_s18  ;;  %v1127_v34 = vpop.xlane.xlu0 %1126  ;;  %s2475_s18 = sshll.u32 %s4105_s2, 4  ;;  %s4132_s18 = int_to_ptr.vmem [resolvable:$true] %s2475_s18 }
 0x427   : > { %3267 = vrcp.f32 %v1127_v34  ;;  %s3379_s25 = scalar_lea.vmem %s4132_s18, 256 }
 0x428   : > { %p3380_p0 = scmp.ne.s32.totalorder %s4132_s18, %s3379_s25 }
 0x429   : > { %1883 = vrot.lane.b32.xlu1 %v3901_v15, %s3491_s24  ;;  %v1689_v15 = vsel %vm1015_vm1, %v1687_v41, -inf }
 0x42a   : > { %p3381_p3 = pnand %p3380_p0, %p4303_p2 }
 0x42c   : > { %p3382_p7 = pneg %p3381_p3 }
 0x42d   : > { %1885 = vrot.lane.b32.xlu1 %v3911_v18, %s3491_s24  ;;  %v1688_v18 = vadd.f32 %v1686_v42, %v3967_v46 }
 0x42f   : > { %v1692_v43 = vsel %vm1015_vm1, %v1688_v18, -inf }
 0x430   : > { %v3266_v35 = vpop.eup %3265 }
 0x431   : > { %v3268_v36 = vpop.eup %3267  ;;  %v1134_v37 = vmul.f32 %v3266_v35, %v3258_v9 }
 0x432   : > { %v1132_v38 = vmul.f32 %v3268_v36, %v3260_v10  ;;  %v706_v10 = vld [vmem:[#allocation5 + $0x10] sm:$0xff] }
 0x433   : > { %v1142_v25 = vmul.f32 %v3953_v32, %v1134_v37  ;;  %v3052_v13 = vpack.c.bf16 %v707_v11, %v706_v10 }
 0x434   : > { %v1141_v39 = vmul.f32 %v3953_v32, %v1132_v38 }
 0x436   : > { %2857 = vmatprep.mubr.msk.f32.mxu0 %vm1015_vm1, %v1141_v39 }
 0x437   : > { %2858 = vmatmul.mubr.msk.f32.vlgmr.msra.gmra.mrb[2].mxu0 %vm1015_vm1, %v1142_v25 }
 0x445   : > { %1690 = vmax.xlane.f32.xlu0 %v1689_v15 }
 0x451   : > { %1693 = vmax.xlane.f32.xlu1 %v1692_v43 }
 0x49d   : > { %v1333_v44 = vpop.xlane.xlu0 %1332 }
 0x49e   : > { %3269 = vrcp.f32 %v1333_v44 }
 0x4a1   : > { %v1336_v45 = vpop.xlane.xlu1 %1335  ;;  %v3235_v47 = vpop.permute.xlu0 %3234 }
 0x4a2   : > { %3271 = vrcp.f32 %v1336_v45  ;;  %v3237_v48 = vunpack.i.h.bf16 %v3235_v47  ;;  %v3236_v49 = vunpack.i.l.bf16 %v3235_v47 }
 0x4a4   : > { %v3048_v50 = vpack.c.bf16 %v3237_v48, %v3236_v49  ;;  %v708_v48 = vld [vmem:[#allocation5 + $0x20] sm:$0xff]  ;;  %v709_v49 = vld [vmem:[#allocation5 + $0x28] sm:$0xff] }
 0x4a5   : > { %v3240_v51 = vpop.permute.xlu1 %3239 }
 0x4a6   : > { %v3242_v52 = vunpack.i.h.bf16 %v3240_v51  ;;  %v3241_v53 = vunpack.i.l.bf16 %v3240_v51  ;;  %3049 = vmatprep.subr.bf16.mxu0 %v3048_v50 }
 0x4a7   : > { %3051 = vmatpush3.bf16.msra.mxu0 %v3048_v50 }
 0x4a8   : > { %v3270_v54 = vpop.eup %3269  ;;  %v3074_v55 = vpack.c.bf16 %v3242_v52, %v3241_v53  ;;  %3053 = vmatprep.subr.bf16.mxu0 %v3052_v13 }
 0x4a9   : > { %v1884_v56 = vpop.permute.xlu1 %1883  ;;  %v1338_v57 = vmul.f32 %v3270_v54, %v3262_v27 }
 0x4aa   : > { %3076 = vmatprep.subr.msk.bf16.mxu1 %vm3924_vm2, %v3074_v55  ;;  %2913 = vmatprep.mubr.msk.f32.mxu1 %vm1015_vm1, %v1884_v56 }
 0x4ab   : > { %3079 = vmatpush3.bf16.xpose.msk.msra.mxu1 %vm3924_vm2, %v3074_v55  ;;  %v1341_v58 = vmul.f32 %v1338_v57, %v3953_v32 }
 0x4ac   : > { %v3272_v59 = vpop.eup %3271 }
 0x4ad   : > { %v1340_v60 = vmul.f32 %v3272_v59, %v3264_v29  ;;  %2871 = vmatprep.mubr.msk.f32.mxu0 %vm1015_vm1, %v1341_v58  ;;  %v1886_v62 = vpop.permute.xlu1 %1885 }
 0x4af   : > { %v1342_v61 = vmul.f32 %v1340_v60, %v3953_v32 }
 0x4b1   : > { %2872 = vmatmul.mubr.msk.f32.vlgmr.msra.gmra.mrb[4].mxu0 %vm1015_vm1, %v1342_v61 }
 0x4b2   : > { %2914 = vmatmul.mubr.msk.f32.vlgmr.msra.gmra.mrb[10].mxu1 %vm1015_vm1, %v1886_v62  ;;  %3055 = vmatpush3.bf16.msra.mxu0 %v3052_v13 }
 0x4b3   : > { %3057 = vmatprep.subr.bf16.mxu0 %v3056_v19 }
 0x4d2   : > { %v1691_v63 = vpop.xlane.xlu0 %1690 }
 0x4d3   : > { %v1695_v2 = vsub.f32 %v1687_v41, %v1691_v63 }
 0x4d5   : > { %v1697_v5 = vmul.f32 1.442695, %v1695_v2 }
 0x4de   : > { %v1694_v3 = vpop.xlane.xlu1 %1693 }
 0x4df   : > { %v1696_v4 = vsub.f32 %v1688_v18, %v1694_v3  ;;  %v710_v3 = vld [vmem:[#allocation5 + $0x30] sm:$0xff] }
 0x4e1   : > { %v1699_v24 = vmul.f32 1.442695, %v1696_v4  ;;  %v711_v4 = vld [vmem:[#allocation5 + $0x38] sm:$0xff] }
 0x4e3   : > { %3273 = vpow2.f32 %v1699_v24 }
 0x4e4   : > { %3275 = vpow2.f32 %v1697_v5 }
 0x4ed   : > { %v3274_v6 = vpop.eup %3273 }
 0x4ee   : > { %v1704_v7 = vsel %vm1015_vm1, %v3274_v6, 0.0  ;;  %v3276_v8 = vpop.eup %3275 }
 0x4ef   : > { %1705 = vadd.xlane.f32.xlu0 %v1704_v7  ;;  %v1701_v9 = vsel %vm1015_vm1, %v3276_v8, 0.0  ;;  %v3084_v7 = vpack.c.bf16 %v711_v4, %v710_v3 }
 0x4f3   : > { %1702 = vadd.xlane.f32.xlu0 %v1701_v9 }
 0x509   : > { %3244 = vrot.lane.b32.xlu0 %v3983_v31, %s3489_s3 }
 0x50a   : > { %v2859_v20 = vpop.f32.mrb[2].mxu0 }
 0x50b   : > { %v1215_v22 = vpop.f32.mrb[3].mxu0 }
 0x57c   : > { %v1706_v26 = vpop.xlane.xlu0 %1705 }
 0x57d   : > { %3277 = vrcp.f32 %v1706_v26 }
 0x580   : > { %v1703_v27 = vpop.xlane.xlu0 %1702 }
 0x581   : > { %3279 = vrcp.f32 %v1703_v27 }
 0x584   : > { %v3245_v28 = vpop.permute.xlu0 %3244  ;;  %v2873_v29 = vpop.f32.mrb[4].mxu0 }
 0x585   : > { %v3247_v30 = vunpack.i.h.bf16 %v3245_v28  ;;  %v3246_v33 = vunpack.i.l.bf16 %v3245_v28  ;;  %v1423_v34 = vpop.f32.mrb[5].mxu0  ;;  %v2915_v35 = vpop.f32.mrb[10].mxu1 }
 0x586   : > { %2878 = vmatprep.mubr.msk.f32.mxu0 %vm1015_vm1, %v1423_v34  ;;  %v1965_v36 = vpop.f32.mrb[11].mxu1  ;;  %v1975_v38 = vmul.f32 0.25, %v2915_v35  ;;  %v2230_v35 = vld [vmem:[#allocation7] sm:$0xff] }
 0x587   : > { %v3066_v37 = vpack.c.bf16 %v3247_v30, %v3246_v33  ;;  %v1974_v39 = vmul.f32 0.25, %v1965_v36  ;;  %2879 = vmatmul.mubr.msk.f32.vlgmr.msra.gmra.mrb[6].mxu0 %vm1015_vm1, %v2873_v29  ;;  %v3278_v40 = vpop.eup %3277  ;;  %v2231_v36 = vld [vmem:[#allocation7 + $0x8] sm:$0xff] }
 0x588   : > { %3059 = vmatpush3.bf16.msra.mxu0 %v3056_v19  ;;  %2885 = vmatprep.mubr.msk.f32.mxu0 %vm1015_vm1, %v1215_v22  ;;  %v1977_v42 = vadd.f32 %v1975_v38, %v3967_v46  ;;  %v1710_v43 = vmul.f32 %v3278_v40, %v3274_v6  ;;  %v2665_v19 = vld [vmem:[%s4241_s11] ss:$0 sm:$0xff]  ;;  %v2232_v38 = vld [vmem:[#allocation7 + $0x10] sm:$0xff] }
 0x589   : > { %3067 = vmatprep.subr.bf16.mxu0 %v3066_v37  ;;  %v1976_v25 = vadd.f32 %v1974_v39, %v3967_v46  ;;  %v3070_v46 = vpack.c.bf16 %v709_v49, %v708_v48  ;;  %v2233_v39 = vld [vmem:[#allocation7 + $0x18] sm:$0xff]  ;;  %v2234_v40 = vld [vmem:[#allocation7 + $0x20] sm:$0xff] }
 0x58a   : > { %v1981_v45 = vsel %vm1015_vm1, %v1977_v42, -inf  ;;  %v1712_v47 = vmul.f32 %v1710_v43, %v3953_v32  ;;  %v2332_v49 = vld [vmem:[%s4246_s16 + $0x20] sm:$0xff] }
 0x58b   : > { %v3280_v41 = vpop.eup %3279  ;;  %v1978_v15 = vsel %vm1015_vm1, %v1976_v25, -inf }
 0x58c   : > { %1979 = vmax.xlane.f32.xlu1 %v1978_v15  ;;  %v1708_v18 = vmul.f32 %v3280_v41, %v3276_v8  ;;  %v2235_v41 = vld [vmem:[#allocation7 + $0x28] sm:$0xff] }
 0x58d   : > { %v3096_v15 = vpack.c.bf16 %v2235_v41, %v2234_v40 }
 0x58e   : > { %v1711_v44 = vmul.f32 %v1708_v18, %v3953_v32  ;;  %v2237_v18 = vld [vmem:[#allocation7 + $0x38] sm:$0xff] }
 0x58f   : > { %2886 = vmatmul.mubr.msk.f32.vlgmr.msra.gmra.mrb[6].mxu0 %vm1015_vm1, %v2859_v20 }
 0x590   : > { %3069 = vmatpush3.bf16.msra.mxu0 %v3066_v37  ;;  %1982 = vmax.xlane.f32.xlu1 %v1981_v45  ;;  %v3088_v37 = vpack.c.bf16 %v2231_v36, %v2230_v35  ;;  %v2342_v36 = vld [vmem:[%s4246_s16 + $0x70] sm:$0xff] }
 0x591   : > { %2899 = vmatprep.mubr.msk.f32.mxu0 %vm1015_vm1, %v1711_v44  ;;  %3071 = vmatprep.subr.bf16.mxu0 %v3070_v46  ;;  %v2330_v44 = vld [vmem:[%s4246_s16 + $0x10] sm:$0xff] }
 0x592   : > { %3089 = vmatprep.subr.bf16.mxu1 %v3088_v37 }
 0x593   : > { %2900 = vmatmul.mubr.msk.f32.vlgmr.msra.gmra.mrb[8].mxu0 %vm1015_vm1, %v1712_v47  ;;  %3091 = vmatpush3.bf16.msra.mxu1 %v3088_v37  ;;  %v2331_v47 = vld [vmem:[%s4246_s16 + $0x18] sm:$0xff] }
 0x594   : > { %3073 = vmatpush3.bf16.msra.mxu0 %v3070_v46  ;;  %v3108_v48 = vpack.c.bf16 %v2331_v47, %v2330_v44  ;;  %v2333_v46 = vld [vmem:[%s4246_s16 + $0x28] sm:$0xff]  ;;  %v2343_v37 = vld [vmem:[%s4246_s16 + $0x78] sm:$0xff] }
 0x619   : > { %v1980_v50 = vpop.xlane.xlu1 %1979 }
 0x61a   : > { %v1984_v51 = vsub.f32 %v1976_v25, %v1980_v50  ;;  %v3092_v25 = vpack.c.bf16 %v2233_v39, %v2232_v38  ;;  %v3112_v50 = vpack.c.bf16 %v2333_v46, %v2332_v49  ;;  %v3132_v38 = vpack.c.bf16 %v2343_v37, %v2342_v36  ;;  %v2668_v39 = vld [vmem:[%s4301_s17] ss:$0 sm:$0xff] }
 0x61c   : > { %v1986_v54 = vmul.f32 1.442695, %v1984_v51  ;;  %3093 = vmatprep.subr.bf16.mxu1 %v3092_v25  ;;  %v2334_v51 = vld [vmem:[%s4246_s16 + $0x30] sm:$0xff] }
 0x61d   : > { %v1983_v52 = vpop.xlane.xlu1 %1982  ;;  %3095 = vmatpush3.bf16.msra.mxu1 %v3092_v25 }
 0x61e   : > { %v1985_v53 = vsub.f32 %v1977_v42, %v1983_v52  ;;  %v2236_v42 = vld [vmem:[#allocation7 + $0x30] sm:$0xff]  ;;  %3097 = vmatprep.subr.bf16.mxu1 %v3096_v15  ;;  %v2335_v52 = vld [vmem:[%s4246_s16 + $0x38] sm:$0xff] }
 0x61f   : > { %v3100_v43 = vpack.c.bf16 %v2237_v18, %v2236_v42 }
 0x620   : > { %v1988_v55 = vmul.f32 1.442695, %v1985_v53  ;;  %v3116_v53 = vpack.c.bf16 %v2335_v52, %v2334_v51 }
 0x621   : > { %3099 = vmatpush3.bf16.msra.mxu1 %v3096_v15 }
 0x622   : > { %3281 = vpow2.f32 %v1988_v55  ;;  %3101 = vmatprep.subr.bf16.mxu1 %v3100_v43  ;;  %v2337_v55 = vld [vmem:[%s4246_s16 + $0x48] sm:$0xff] }
 0x623   : > { %3283 = vpow2.f32 %v1986_v54  ;;  %v2336_v54 = vld [vmem:[%s4246_s16 + $0x40] sm:$0xff] }
 0x625   : > { %3103 = vmatpush3.bf16.msra.mxu1 %v3100_v43 }
 0x62c   : > { %v3282_v56 = vpop.eup %3281 }
 0x62d   : > { %v1993_v57 = vsel %vm1015_vm1, %v3282_v56, 0.0  ;;  %v3284_v58 = vpop.eup %3283 }
 0x62e   : > { %1994 = vadd.xlane.f32.xlu1 %v1993_v57  ;;  %v1990_v59 = vsel %vm1015_vm1, %v3284_v58, 0.0  ;;  %v2338_v57 = vld [vmem:[%s4246_s16 + $0x50] sm:$0xff] }
 0x632   : > { %1991 = vadd.xlane.f32.xlu1 %v1990_v59 }
 0x643   : > { %3249 = vrot.lane.b32.xlu1 %v3983_v31, %s3491_s24  ;;  %s3493_s24 = smov [#allocation9]  }
 0x666   : > { %v2901_v60 = vpop.f32.mrb[8].mxu0 }
 0x667   : > { %v1791_v61 = vpop.f32.mrb[9].mxu0 }
 0x668   : > { %2906 = vmatprep.mubr.msk.f32.mxu0 %vm1015_vm1, %v1791_v61  ;;  %v2341_v61 = vld [vmem:[%s4246_s16 + $0x68] sm:$0xff] }
 0x669   : > { %2907 = vmatmul.mubr.msk.f32.vlgmr.msra.gmra.mrb[6].mxu0 %vm1015_vm1, %v2901_v60  ;;  %v2340_v60 = vld [vmem:[%s4246_s16 + $0x60] sm:$0xff] }
 0x6bb   : > { %v1995_v62 = vpop.xlane.xlu1 %1994 }
 0x6bc   : > { %3285 = vrcp.f32 %v1995_v62  ;;  %v3128_v62 = vpack.c.bf16 %v2341_v61, %v2340_v60 }
 0x6bf   : > { %v1992_v63 = vpop.xlane.xlu1 %1991 }
 0x6c0   : > { %3287 = vrcp.f32 %v1992_v63 }
 0x6c3   : > { %v3250_v2 = vpop.permute.xlu1 %3249 }
 0x6c4   : > { %v3252_v5 = vunpack.i.h.bf16 %v3250_v2  ;;  %v3251_v24 = vunpack.i.l.bf16 %v3250_v2 }
 0x6c6   : > { %v3080_v6 = vpack.c.bf16 %v3252_v5, %v3251_v24  ;;  %v3286_v8 = vpop.eup %3285 }
 0x6c7   : > { %v1999_v9 = vmul.f32 %v3286_v8, %v3282_v56  ;;  %v3120_v56 = vpack.c.bf16 %v2337_v55, %v2336_v54 }
 0x6c8   : > { %3081 = vmatprep.subr.bf16.mxu0 %v3080_v6 }
 0x6c9   : > { %3083 = vmatpush3.bf16.msra.mxu0 %v3080_v6  ;;  %v2001_v13 = vmul.f32 %v1999_v9, %v3953_v32 }
 0x6ca   : > { %v3288_v31 = vpop.eup %3287  ;;  %3085 = vmatprep.subr.bf16.mxu0 %v3084_v7 }
 0x6cb   : > { %v1997_v10 = vmul.f32 %v3288_v31, %v3284_v58  ;;  %v2339_v58 = vld [vmem:[%s4246_s16 + $0x58] sm:$0xff] }
 0x6cc   : > { %v3124_v59 = vpack.c.bf16 %v2339_v58, %v2338_v57 }
 0x6cd   : > { %v2000_v11 = vmul.f32 %v1997_v10, %v3953_v32 }
 0x6cf   : > { %2920 = vmatprep.mubr.msk.f32.mxu0 %vm1015_vm1, %v2000_v11 }
 0x6d0   : > { %2921 = vmatmul.mubr.msk.f32.vlgmr.msra.gmra.mrb[10].mxu0 %vm1015_vm1, %v2001_v13 }
 0x6d1   : > { %3087 = vmatpush3.bf16.msra.mxu0 %v3084_v7 }
 0x7a3   : > { %v2922_v14 = vpop.f32.mrb[10].mxu0 }
 0x7a4   : > { %v2080_v17 = vpop.f32.mrb[11].mxu0 }
 0x7a5   : > { %2927 = vmatprep.mubr.msk.f32.mxu0 %vm1015_vm1, %v2080_v17 }
 0x7a6   : > { %2928 = vmatmul.mubr.msk.f32.vlgmr.msra.gmra.mrb[6].mxu0 %vm1015_vm1, %v2922_v14 }
 0x879   : > { %v2929_v20 = vpop.f32.mrb[6].mxu0 }
 0x87a   : > { %v2173_v22 = vadd.f32 %v2929_v20, %v3795_v1  ;;  %v2161_v26 = vpop.f32.mrb[7].mxu0 }
 0x87b   : > { %v2172_v32 = vadd.f32 %v2161_v26, %v3793_v0  ;;  %v2666_v26 = vld [vmem:[%s4242_s12] ss:$0 sm:$0xff] }
 0x87c   : > { %v4044_v27 = vadd.f32 %v2665_v19, %v2173_v22 }
 0x87d   : > { %v4046_v28 = vadd.f32 %v2665_v19, %v2172_v32 }
 0x87e   : > { %v2187_v29 = vsel %vm718_vm0, %v4044_v27, 0.0  ;;  %v2193_v0 = vmul.f32 %v4044_v27, %v4044_v27 }
 0x87f   : > { %2188 = vadd.xlane.f32.xlu1 %v2187_v29  ;;  %v2184_v30 = vsel %vm718_vm0, %v4046_v28, 0.0  ;;  %v2192_v33 = vmul.f32 %v4046_v28, %v4046_v28  ;;  %v2667_v29 = vld [vmem:[%s4300_s28] ss:$0 sm:$0xff] }
 0x880   : > { %2185 = vadd.xlane.f32.xlu0 %v2184_v30  ;;  %v2197_v34 = vsel %vm718_vm0, %v2193_v0, 0.0 }
 0x881   : > { %v2194_v1 = vsel %vm718_vm0, %v2192_v33, 0.0 }
 0x884   : > { %2195 = vadd.xlane.f32.xlu0 %v2194_v1 }
 0x888   : > { %2198 = vadd.xlane.f32.xlu0 %v2197_v34 }
 0x890   : > { %2432 = vrot.lane.b32.xlu1 %v3899_v12, %s3492_s15  ;;  %v2328_v12 = vld [vmem:[%s4246_s16] sm:$0xff] }
 0x89e   : > { %2430 = vrot.lane.b32.xlu0 %v3903_v16, %s3492_s15  ;;  %v2329_v16 = vld [vmem:[%s4246_s16 + $0x8] sm:$0xff]  ;;  %s4260_s15 = sshll.u32 %s3618_s1, 8 }
 0x89f   : > { %v3104_v45 = vpack.c.bf16 %v2329_v16, %v2328_v12  ;;  %s4139_s27 = scalar_lea.hbm %s4302_s10, %s4260_s15 }
 0x8a1   : > { %3105 = vmatprep.subr.bf16.mxu0 %v3104_v45 }
 0x8a2   : > { %3107 = vmatpush3.bf16.msra.mxu0 %v3104_v45 }
 0x8a3   : > { %3109 = vmatprep.subr.bf16.mxu0 %v3108_v48 }
 0x8a6   : > { %3111 = vmatpush3.bf16.msra.mxu0 %v3108_v48 }
 0x8a7   : > { %3113 = vmatprep.subr.bf16.mxu0 %v3112_v50 }
 0x8aa   : > { %3115 = vmatpush3.bf16.msra.mxu0 %v3112_v50 }
 0x8ab   : > { %3117 = vmatprep.subr.bf16.mxu0 %v3116_v53 }
 0x8ae   : > { %3119 = vmatpush3.bf16.msra.mxu0 %v3116_v53 }
 0x8af   : > { %3121 = vmatprep.subr.bf16.mxu0 %v3120_v56 }
 0x8b2   : > { %3123 = vmatpush3.bf16.msra.mxu0 %v3120_v56 }
 0x8b3   : > { %3125 = vmatprep.subr.bf16.mxu0 %v3124_v59 }
 0x8b6   : > { %3127 = vmatpush3.bf16.msra.mxu0 %v3124_v59 }
 0x8b7   : > { %3129 = vmatprep.subr.bf16.mxu0 %v3128_v62 }
 0x8ba   : > { %3131 = vmatpush3.bf16.msra.mxu0 %v3128_v62 }
 0x8bb   : > { %3133 = vmatprep.subr.bf16.mxu0 %v3132_v38 }
 0x8be   : > { %3135 = vmatpush3.bf16.msra.mxu0 %v3132_v38 }
 0x90c   : > { %v2189_v63 = vpop.xlane.xlu1 %2188 }
 0x90d   : > { %v2186_v2 = vpop.xlane.xlu0 %2185  ;;  %v2191_v6 = vmul.f32 0.015625, %v2189_v63 }
 0x90e   : > { %v2190_v3 = vmul.f32 0.015625, %v2186_v2 }
 0x90f   : > { %v2203_v10 = vmul.f32 %v2191_v6, %v2191_v6  ;;  %v2207_v30 = vsub.f32 %v4044_v27, %v2191_v6 }
 0x910   : > { %v2433_v4 = vpop.permute.xlu1 %2432  ;;  %v2202_v7 = vmul.f32 %v2190_v3, %v2190_v3  ;;  %v2206_v20 = vsub.f32 %v4046_v28, %v2190_v3 }
 0x911   : > { %v2437_v5 = vsel %vm718_vm0, %v3918_v21, %v2433_v4  ;;  %v2196_v24 = vpop.xlane.xlu0 %2195 }
 0x912   : > { %2439 = vst [vmem:[%s4105_s2 + $0x8] sm:$0xff] %v2437_v5  ;;  %v2200_v8 = vmul.f32 0.015625, %v2196_v24 }
 0x914   : > { %v2204_v31 = vsub.f32 %v2200_v8, %v2202_v7 }
 0x915   : > { %v2199_v9 = vpop.xlane.xlu0 %2198 }
 0x916   : > { %v2208_v11 = vadd.f32 1e-05, %v2204_v31  ;;  %v2201_v13 = vmul.f32 0.015625, %v2199_v9 }
 0x918   : > { %3289 = vrsqrt.f32 %v2208_v11  ;;  %v2205_v14 = vsub.f32 %v2201_v13, %v2203_v10 }
 0x919   : > { %v2431_v17 = vpop.permute.xlu0 %2430 }
 0x91a   : > { %v2209_v19 = vadd.f32 1e-05, %v2205_v14  ;;  %v2436_v21 = vsel %vm718_vm0, %v3920_v23, %v2431_v17 }
 0x91b   : > { %2438 = vst [vmem:[%s4105_s2] sm:$0xff] %v2436_v21  ;;  %s3383_s2 = sshll.u32 %s3493_s24, 4  ;;  %s3384_s2 = int_to_ptr.vmem [resolvable:$false] %s3383_s2 }
 0x91c   : > { %3291 = vrsqrt.f32 %v2209_v19  ;;  %s3385_s17 = scalar_lea.vmem %s3384_s2, 512  ;;  %p3386_p9 = scmp.lt.s32.totalorder %s4132_s18, %s3384_s2 }
 0x91d   : > { %p3387_p12 = scmp.lt.s32.totalorder %s3385_s17, %s3379_s25 }
 0x91f   : > { %p3388_p1 = por %p3387_p12, %p3386_p9 }
 0x921   : > { %p3389_p13 = pnand %p3388_p1, %p3382_p7 }
 0x922   : > { %v3290_v22 = vpop.eup %3289 }
 0x923   : > { %v2212_v32 = vmul.f32 %v3290_v22, %v2206_v20 }
 0x925   : > { %v2220_v33 = vmul.f32 %v2666_v26, %v2212_v32 }
 0x926   : > { %v3292_v1 = vpop.eup %3291 }
 0x927   : > { %v2213_v0 = vmul.f32 %v3292_v1, %v2207_v30  ;;  %v2228_v23 = vadd.f32 %v2667_v29, %v2220_v33 }
 0x929   : > { %v2221_v34 = vmul.f32 %v2666_v26, %v2213_v0  ;;  %2946 = vmatprep.mubr.msk.f32.mxu1 %vm718_vm0, %v2228_v23 }
 0x92b   : > { %v2229_v35 = vadd.f32 %v2667_v29, %v2221_v34 }
 0x92d   : > { %2947 = vmatmul.mubr.msk.f32.vlgmr.msra.gmra.mrb[12].mxu1 %vm718_vm0, %v2229_v35 }
 0xa00   : > { %v2948_v25 = vpop.f32.mrb[12].mxu1 }
 0xa01   : > { %v2323_v40 = vadd.f32 %v2948_v25, %v2668_v39  ;;  %v2317_v41 = vpop.f32.mrb[13].mxu1 }
 0xa02   : > { %v2318_v15 = vadd.f32 %v2668_v39, %v2317_v41 }
 0xa03   : > { %v2327_v18 = vmax.f32 %v2323_v40, 0.0 }
 0xa04   : > { %v2326_v42 = vmax.f32 %v2318_v15, 0.0 }
 0xa06   : > { %2981 = vmatprep.mubr.f32.mxu0 %v2326_v42 }
 0xa07   : > { %2982 = vmatmul.mubr.f32.vlgmr.msra.gmra.mrb[12].mxu0 %v2327_v18 }
 0xa08   : > { %3392 = shalt.err (!%p3389_p13)
}
 0xa09   : > { %s3393_s28 = scalar_lea.hbm %s4139_s27, 256  ;;  %s3397_s24 = scalar_lea.hbm %s4302_s10, 512 }
 0xa0a   : > { %p3394_p6 = scmp.ne.s32.totalorder %s4139_s27, %s3393_s28  ;;  %p3398_p5 = scmp.lt.u32.totalorder %s4139_s27, %s4302_s10 }
 0xa0b   : > { %p3399_p8 = scmp.lt.u32.totalorder %s3397_s24, %s3393_s28  ;;  %p3401_p0 = scmp.lt.u32.totalorder %s3393_s28, %s4139_s27 }
 0xa0c   : > { %p3395_p10 = pnand %p3394_p6, %p4303_p2 }
 0xa0d   : > { %p3400_p11 = por %p3399_p8, %p3398_p5 }
 0xa0e   : > { %p3396_p4 = pneg %p3395_p10 }
 0xa0f   : > { %p3402_p3 = por %p3401_p0, %p3400_p11 }
 0xa11   : > { %p3403_p7 = pnand %p3402_p3, %p3396_p4 }
 0xa13   : > { %3406 = shalt.err (!%p3403_p7)
}
 0xa14   : > { %s3494_s25 = smov 128   ;;  %s3495_s15 = smov 8  }
 0xa15   : > { %s4304_s26 = scalar_lea.sflag [#allocation10], %s3778_s0  ;;  %s4305_s3 = sld [smem:[#allocation28_spill]] }
 0xa16   : > { %3153 = dma.vmem_to_hbm [thread:$0]  (%p4303_p2), %s4132_s18, 256, %s4139_s27, %s4304_s26, %s3494_s25, %s3494_s25, %s3495_s15  }
 0xa17   : > { %s664_s24 = scalar_lea.vmem [#allocation8], %s3781_s22  ;;  %s4306_s4 = sshll.u32 %s3618_s1, 8 }
 0xa18   : > { %s2459_s2 = sshll.u32 %s664_s24, 4  ;;  %s4307_s7 = sld [smem:[#allocation29_spill]]  ;;  %s4181_s2 = int_to_ptr.vmem [resolvable:$true] %s2459_s2 }
 0xa19   : > { %s2441_s22 = scalar_lea.sflag [#allocation4], %s3778_s0  ;;  %s3407_s27 = scalar_lea.vmem %s4181_s2, 256 }
 0xa1a   : > { %p3408_p9 = scmp.ne.s32.totalorder %s4181_s2, %s3407_s27  ;;  %s3496_s1 = smov [#allocation8]  }
 0xa1b   : > { %v2671_v43 = vld [vmem:[%s4305_s3] ss:$0 sm:$0xff]  ;;  %s3411_s26 = sshll.u32 %s3496_s1, 4  ;;  %s3412_s26 = int_to_ptr.vmem [resolvable:$false] %s3411_s26 }
 0xa1c   : > { %p3409_p12 = pnand %p3408_p9, %p4303_p2  ;;  %p3414_p13 = scmp.lt.s32.totalorder %s4181_s2, %s3412_s26 }
 0xa1e   : > { %s4179_s18 = scalar_lea.hbm %s4307_s7, %s4306_s4  ;;  %p3410_p1 = pneg %p3409_p12 }
 0xa1f   : > { %s3413_s4 = scalar_lea.vmem %s3412_s26, 512 }
 0xa20   : > { %p3415_p6 = scmp.lt.s32.totalorder %s3413_s4, %s3407_s27 }
 0xa22   : > { %p3416_p10 = por %p3415_p6, %p3414_p13 }
 0xa24   : > { %p3417_p4 = pnand %p3416_p10, %p3410_p1 }
 0xada   : > { %v2983_v12 = vpop.f32.mrb[12].mxu0 }
 0xadb   : > { %v2423_v16 = vadd.f32 %v2983_v12, %v2671_v43  ;;  %v2417_v44 = vpop.f32.mrb[13].mxu0 }
 0xadc   : > { %v2418_v45 = vadd.f32 %v2671_v43, %v2417_v44 }
 0xadd   : > { %v2427_v47 = vadd.f32 %v2423_v16, %v4044_v27 }
 0xade   : > { %v2426_v48 = vadd.f32 %v2418_v45, %v4046_v28 }
 0xadf   : > { %2429 = vst.msk [vmem:[%s664_s24 + $0x8] sm:$0xff] %vm718_vm0, %v2427_v47 }
 0xae0   : > { %2428 = vst.msk [vmem:[%s664_s24] sm:$0xff] %vm718_vm0, %v2426_v48 }
 0xae1   : > { %3420 = shalt.err (!%p3417_p4)
}
 0xae2   : > { %s3421_s5 = scalar_lea.hbm %s4179_s18, 256  ;;  %s3425_s28 = scalar_lea.hbm %s4307_s7, 512 }
 0xae3   : > { %p3422_p5 = scmp.ne.s32.totalorder %s4179_s18, %s3421_s5  ;;  %p3426_p0 = scmp.lt.u32.totalorder %s4179_s18, %s4307_s7 }
 0xae4   : > { %p3427_p3 = scmp.lt.u32.totalorder %s3425_s28, %s3421_s5  ;;  %p3429_p9 = scmp.lt.u32.totalorder %s3421_s5, %s4179_s18 }
 0xae5   : > { %p3423_p8 = pnand %p3422_p5, %p4303_p2 }
 0xae6   : > { %p3428_p7 = por %p3427_p3, %p3426_p0 }
 0xae7   : > { %p3424_p11 = pneg %p3423_p8 }
 0xae8   : > { %p3430_p12 = por %p3429_p9, %p3428_p7 }
 0xaea   : > { %p3431_p1 = pnand %p3430_p12, %p3424_p11 }
 0xaec   : > { %3434 = shalt.err (!%p3431_p1)
}
 0xaed   : > { %3152 = dma.vmem_to_hbm [thread:$0]  (%p4303_p2), %s4181_s2, 256, %s4179_s18, %s2441_s22, %s3494_s25, %s3494_s25, %s3495_s15  }
 0xaee PF: > { %s4308_s27 = sld [smem:[#allocation15_spill]]  ;;  %s4309_s1 = sld [smem:[#allocation16_spill]] }
 0xaef   : > { %p4311_p6 = scmp.ge.s32.totalorder %s3481_s21, 2 }
 0xaf4   : > { %s2490_s26 = sand.u32 1, %s4308_s27   ;;  %p4310_p13 = scmp.ne.s32.totalorder %s4309_s1, 0 }
 0xaf5   : > { %s2491_s4 = scalar_lea.sflag [#allocation4], %s2490_s26 }
 0xaf6   : > { %p3168_p10 = pnand %p4311_p6, %p4310_p13 }
 0xaf8   : > { %3460 = dma.done.wait (!%p3168_p10), %s2491_s4, 256  }
 0xaf9   : > { %3462 = vsyncadd (!%p3168_p10), %s2491_s4, 4294967040  ;;  %s2500_s23 = scalar_lea.sflag [#allocation10], %s2490_s26 }
 0xafa   : > { %3464 = dma.done.wait (!%p3168_p10), %s2500_s23, 256  }
 0xafb   : > { %3466 = vsyncadd (!%p3168_p10), %s2500_s23, 4294967040  ;;  %p37_p2 = scmp.ge.s32.totalorder %s3713_s19, 4   ;;  %s4312_s0 = smov %s3473_s30 }
 0xafc   : > { %s4313_s30 = smov %s3477_s20  ;;  %s4314_s20 = smov %s3729_s29 }
 0xafd   : > { %s4315_s21 = smov %s3713_s19  ;;  %39 = sbr.rel (!%p37_p2) target bundleno = 23 (0x17), region = 165 }
 0xb04   :  { %2505 = vsyncpa [#allocation3], 1 }
 0xb05   :  { %2507 = vsyncpa [#allocation3 + $0x1], 1 }
 0xb06   :  { %2508 = vsyncpa [#allocation6], 1 }
 0xb07   :  { %2509 = vsyncpa [#allocation4], 1 }
 0xb08   :  { %2511 = vsyncpa [#allocation4 + $0x1], 1 }
 0xb09   :  { %2512 = vsyncpa [#allocation10], 1 }
 0xb0a   :  { %2514 = vsyncpa [#allocation10 + $0x1], 1 }

</bundles_post_ra>
